<compile_context>
chip_gen: v6e
topology: v6e:2x2x1
jax: 0.10.0
libtpu: 0.0.40
codegen_flags: <defaults>
</compile_context>

<pallas_src>
import jax
import jax.numpy as jnp
from jax import lax
from jax.experimental import pallas as pl
from jax.experimental.pallas import tpu as pltpu

HIDDEN = 32
INPUT = 1
GATES = 4 * HIDDEN            # 128 -> lane/sublane-friendly
B_BLK = 128                   # lane-dense batch block per grid shard
T_BLK_CAP = 512               # max timesteps per streamed x chunk (256 KiB/buffer)
UNROLL = 8                    # partial unroll of the recurrence loop


def _sigmoid(z):
    # sigma(x) = 0.5 * tanh(0.5 * x) + 0.5 : one EUP push + cheap VPU mul/add.
    return 0.5 * jnp.tanh(0.5 * z) + 0.5


def _make_kernel(t_blk, n_chunks, tail):
    """Kernel factory; t_blk / n_chunks / tail are static Python ints."""

    def kernel(x_ref, whh_ref, wih_ref, bias_ref, out_ref, h_sc, c_sc):
        # x_ref   : (t_blk, B_BLK)  raw input chunk; time on sublanes, batch on lanes
        # whh_ref : (4H, H)         recurrent weights (gates = W_hh @ h)
        # wih_ref : (4H, 1)         w_ih[:, 0]  (input_size == 1)
        # bias_ref: (4H, 1)         b_ih + b_hh
        # out_ref : (H, B_BLK)      last hidden state for this batch shard
        # h_sc/c_sc: (H, B_BLK)     recurrent state carried across time chunks
        chunk = pl.program_id(1)

        @pl.when(chunk == 0)
        def _():
            h_sc[...] = jnp.zeros_like(h_sc)
            c_sc[...] = jnp.zeros_like(c_sc)

        # Loop-invariant loads / lane-broadcasts, hoisted above the time loop.
        whh = whh_ref[...]                                          # (4H, H)
        wih_b = jnp.broadcast_to(wih_ref[...], (GATES, B_BLK))      # (4H, B_BLK)
        bias_b = jnp.broadcast_to(bias_ref[...], (GATES, B_BLK))    # (4H, B_BLK)

        def step(i, carry):
            h, c = carry
            x_row = x_ref[pl.ds(i, 1), :]                           # (1, B_BLK)
            gates = (jnp.dot(whh, h, preferred_element_type=jnp.float32)
                     + wih_b * x_row + bias_b)                      # (4H, B_BLK)
            # Gate splits are sublane slices at multiples of 8 (no relayout).
            i_g = _sigmoid(gates[0 * HIDDEN:1 * HIDDEN, :])
            f_g = _sigmoid(gates[1 * HIDDEN:2 * HIDDEN, :])
            g_g = jnp.tanh(gates[2 * HIDDEN:3 * HIDDEN, :])
            o_g = _sigmoid(gates[3 * HIDDEN:4 * HIDDEN, :])
            c_new = f_g * c + i_g * g_g
            h_new = o_g * jnp.tanh(c_new)
            return (h_new, c_new)

        def run(n_steps):
            h, c = lax.fori_loop(0, n_steps, step, (h_sc[...], c_sc[...]),
                                 unroll=min(UNROLL, n_steps))
            h_sc[...] = h
            c_sc[...] = c

        if n_chunks == 1:
            run(tail)                      # single (possibly short) chunk
        elif tail == t_blk:
            run(t_blk)                     # every chunk is full: no masking ever
        else:
            is_last = chunk == n_chunks - 1

            @pl.when(jnp.logical_not(is_last))
            def _():
                run(t_blk)                 # steady state: unmasked full chunk

            @pl.when(is_last)
            def _():
                run(tail)                  # static-length tail: shorter loop, no mask

        # Output block is resident across the chunk axis: write it exactly once.
        @pl.when(chunk == n_chunks - 1)
        def _():
            out_ref[...] = h_sc[...]

    return kernel


def demand_lstm_forward(x, params):
    """x: (B, S, 1) float32.  Returns (B, 1) float32."""
    w_ih, w_hh, b_ih, b_hh, w_fc, b_fc = params
    B, S, _ = x.shape
    if S < 1:
        raise ValueError("sequence length must be >= 1")

    # Batch on the lane axis, padded to full lane width, sharded over grid axis 0.
    B_pad = ((B + B_BLK - 1) // B_BLK) * B_BLK
    n_bshards = B_pad // B_BLK

    # Time chunking: the streamed x block is only t_blk*B_BLK*4 B, so chunks can
    # be large on all generations (v5e 16 MiB scoped default, v7x 64 MiB VMEM).
    if S <= T_BLK_CAP:
        t_blk, n_chunks = S, 1
    else:
        t_blk = T_BLK_CAP
        n_chunks = pl.cdiv(S, t_blk)
    S_pad = n_chunks * t_blk
    tail = S - (n_chunks - 1) * t_blk

    # Raw input, time on sublanes / batch on lanes.  No (S,4H,B) tensor in HBM.
    x_sb = jnp.transpose(x[:, :, 0], (1, 0)).astype(jnp.float32)    # (S, B)
    x_sb = jnp.pad(x_sb, ((0, S_pad - S), (0, B_pad - B)))

    whh = w_hh.astype(jnp.float32)                                  # (4H, H)
    wih_col = w_ih[:, :1].astype(jnp.float32)                       # (4H, 1)
    bias_col = (b_ih + b_hh).astype(jnp.float32)[:, None]           # (4H, 1)

    kernel = _make_kernel(t_blk, n_chunks, tail)

    grid_spec = pltpu.PrefetchScalarGridSpec(
        num_scalar_prefetch=0,
        grid=(n_bshards, n_chunks),
        in_specs=[
            pl.BlockSpec((t_blk, B_BLK), lambda b, c: (c, b)),      # x chunk
            pl.BlockSpec((GATES, HIDDEN), lambda b, c: (0, 0)),     # W_hh
            pl.BlockSpec((GATES, 1), lambda b, c: (0, 0)),          # w_ih column
            pl.BlockSpec((GATES, 1), lambda b, c: (0, 0)),          # combined bias
        ],
        out_specs=pl.BlockSpec((HIDDEN, B_BLK), lambda b, c: (0, b)),
        scratch_shapes=[
            pltpu.VMEM((HIDDEN, B_BLK), jnp.float32),   # h
            pltpu.VMEM((HIDDEN, B_BLK), jnp.float32),   # c
        ],
    )

    h_last = pl.pallas_call(
        kernel,
        out_shape=jax.ShapeDtypeStruct((HIDDEN, B_pad), jnp.float32),
        grid_spec=grid_spec,
        compiler_params=pltpu.CompilerParams(
            dimension_semantics=("parallel", "arbitrary")),
    )(x_sb, whh, wih_col, bias_col)

    # Final Linear(32, 1): lane-dense in XLA on the real batch rows only.
    return h_last[:, :B].T @ w_fc.T + b_fc


def init_params(key):
    """Deterministic init mirroring PyTorch's uniform(-1/sqrt(H), 1/sqrt(H))."""
    k = 1.0 / jnp.sqrt(jnp.float32(HIDDEN))
    keys = jax.random.split(key, 6)
    w_ih = jax.random.uniform(keys[0], (4 * HIDDEN, INPUT), jnp.float32, -k, k)
    w_hh = jax.random.uniform(keys[1], (4 * HIDDEN, HIDDEN), jnp.float32, -k, k)
    b_ih = jax.random.uniform(keys[2], (4 * HIDDEN,), jnp.float32, -k, k)
    b_hh = jax.random.uniform(keys[3], (4 * HIDDEN,), jnp.float32, -k, k)
    w_fc = jax.random.uniform(keys[4], (1, HIDDEN), jnp.float32, -k, k)
    b_fc = jax.random.uniform(keys[5], (1,), jnp.float32, -k, k)
    return (w_ih, w_hh, b_ih, b_hh, w_fc, b_fc)


def reference_forward(x, params):
    """Pure-JAX reference replicating torch.nn.LSTM + Linear semantics."""
    w_ih, w_hh, b_ih, b_hh, w_fc, b_fc = params
    B = x.shape[0]
    h0 = jnp.zeros((B, HIDDEN), jnp.float32)
    c0 = jnp.zeros((B, HIDDEN), jnp.float32)

    def step(carry, x_t):
        h, c = carry
        gates = x_t @ w_ih.T + h @ w_hh.T + b_ih + b_hh
        i_g, f_g, g_g, o_g = jnp.split(gates, 4, axis=-1)
        i_g = jax.nn.sigmoid(i_g)
        f_g = jax.nn.sigmoid(f_g)
        g_g = jnp.tanh(g_g)
        o_g = jax.nn.sigmoid(o_g)
        c_new = f_g * c + i_g * g_g
        h_new = o_g * jnp.tanh(c_new)
        return (h_new, c_new), h_new

    (h_T, _), _ = jax.lax.scan(step, (h0, c0), jnp.transpose(x, (1, 0, 2)))
    return h_T @ w_fc.T + b_fc


if __name__ == "__main__":
    key = jax.random.PRNGKey(0)
    pkey, xkey = jax.random.split(key)
    params = init_params(pkey)

    B, S = 2, 8
    x = jax.random.normal(xkey, (B, S, 1), jnp.float32)

    out = demand_lstm_forward(x, params)
    out = jax.block_until_ready(out)

    ref = jax.block_until_ready(reference_forward(x, params))
    assert out.shape == (B, 1)
    assert jnp.allclose(out, ref, atol=1e-5, rtol=1e-5), (out, ref)
    print("KERNEL_OK")
</pallas_src>

<mosaic_0001>
module attributes {stable_mosaic.version = 11 : i64} {
  func.func @kernel(%arg0: i32, %arg1: i32, %arg2: memref<8x128xf32, #tpu.memory_space<vmem>>, %arg3: memref<128x32xf32, #tpu.memory_space<vmem>>, %arg4: memref<128x1xf32, #tpu.memory_space<vmem>>, %arg5: memref<128x1xf32, #tpu.memory_space<vmem>>, %arg6: memref<32x128xf32, #tpu.memory_space<vmem>>, %arg7: memref<32x128xf32, #tpu.memory_space<vmem>>, %arg8: memref<32x128xf32, #tpu.memory_space<vmem>>) attributes {dimension_semantics = [#tpu.dimension_semantics<parallel>, #tpu.dimension_semantics<arbitrary>], iteration_bounds = array<i64: 1, 1>, scalar_prefetch = 0 : i64, scratch_operands = 2 : i64, tpu.core_type = #tpu.core_type<tc>, window_params = [{transform_indices = @transform_0, window_bounds = array<i64: 8, 128>}, {pipeline_mode = #tpu.pipeline_mode<synchronous>, transform_indices = @transform_1, window_bounds = array<i64: 128, 32>}, {pipeline_mode = #tpu.pipeline_mode<synchronous>, transform_indices = @transform_2, window_bounds = array<i64: 128, 1>}, {pipeline_mode = #tpu.pipeline_mode<synchronous>, transform_indices = @transform_3, window_bounds = array<i64: 128, 1>}, {transform_indices = @transform_4, window_bounds = array<i64: 32, 128>}]} {
    %c0_i32 = arith.constant 0 : i32
    %0 = arith.cmpi eq, %arg1, %c0_i32 : i32
    %1 = arith.extui %0 : i1 to i32
    %c0_i32_0 = arith.constant 0 : i32
    %2 = arith.cmpi ne, %1, %c0_i32_0 : i32
    scf.if %2 {
      %cst_104 = arith.constant 0.000000e+00 : f32
      %321 = vector.broadcast %cst_104 : f32 to vector<32x128xf32>
      %c0_105 = arith.constant 0 : index
      %c0_106 = arith.constant 0 : index
      %322 = vector.load %arg7[%c0_105, %c0_106] : memref<32x128xf32, #tpu.memory_space<vmem>>, vector<32x128xf32>
      tpu.vector_store %arg7[%c0_105, %c0_106], %321 {strides = array<i32>} : memref<32x128xf32, #tpu.memory_space<vmem>>, vector<32x128xf32>,
      %cst_107 = arith.constant 0.000000e+00 : f32
      %323 = vector.broadcast %cst_107 : f32 to vector<32x128xf32>
      %c0_108 = arith.constant 0 : index
      %c0_109 = arith.constant 0 : index
      %324 = vector.load %arg8[%c0_108, %c0_109] : memref<32x128xf32, #tpu.memory_space<vmem>>, vector<32x128xf32>
      tpu.vector_store %arg8[%c0_108, %c0_109], %323 {strides = array<i32>} : memref<32x128xf32, #tpu.memory_space<vmem>>, vector<32x128xf32>,
    } else {
    }
    %c0 = arith.constant 0 : index
    %c0_1 = arith.constant 0 : index
    %3 = vector.load %arg3[%c0, %c0_1] : memref<128x32xf32, #tpu.memory_space<vmem>>, vector<128x32xf32>
    %c0_2 = arith.constant 0 : index
    %c0_3 = arith.constant 0 : index
    %4 = vector.load %arg4[%c0_2, %c0_3] : memref<128x1xf32, #tpu.memory_space<vmem>>, vector<128x1xf32>
    %5 = vector.shape_cast %4 : vector<128x1xf32> to vector<128x1xf32>
    %6 = vector.broadcast %5 : vector<128x1xf32> to vector<128x128xf32>
    %c0_4 = arith.constant 0 : index
    %c0_5 = arith.constant 0 : index
    %7 = vector.load %arg5[%c0_4, %c0_5] : memref<128x1xf32, #tpu.memory_space<vmem>>, vector<128x1xf32>
    %8 = vector.shape_cast %7 : vector<128x1xf32> to vector<128x1xf32>
    %9 = vector.broadcast %8 : vector<128x1xf32> to vector<128x128xf32>
    %c0_6 = arith.constant 0 : index
    %c0_7 = arith.constant 0 : index
    %10 = vector.load %arg7[%c0_6, %c0_7] : memref<32x128xf32, #tpu.memory_space<vmem>>, vector<32x128xf32>
    %c0_8 = arith.constant 0 : index
    %c0_9 = arith.constant 0 : index
    %11 = vector.load %arg8[%c0_8, %c0_9] : memref<32x128xf32, #tpu.memory_space<vmem>>, vector<32x128xf32>
    %c0_i32_10 = arith.constant 0 : i32
    %12 = arith.index_cast %c0_i32_10 : i32 to index
    %c0_11 = arith.constant 0 : index
    %13 = vector.load %arg2[%12, %c0_11] : memref<8x128xf32, #tpu.memory_space<vmem>>, vector<1x128xf32>
    %cst = arith.constant dense<0.000000e+00> : vector<128x128xf32>
    %14 = tpu.matmul %3, %10, %cst {dimension_numbers = #tpu.dot_dimension_numbers<[1], [0], [0], [1], [0, 0, 1, 1], [], []>} : vector<128x32xf32>, vector<32x128xf32>, vector<128x128xf32> -> vector<128x128xf32>
    %15 = vector.broadcast %13 : vector<1x128xf32> to vector<128x128xf32>
    %16 = arith.mulf %6, %15 : vector<128x128xf32>
    %17 = arith.addf %14, %16 : vector<128x128xf32>
    %18 = arith.addf %17, %9 : vector<128x128xf32>
    %19 = vector.extract_strided_slice %18 {offsets = [0, 0], sizes = [32, 128], strides = [1, 1]} : vector<128x128xf32> to vector<32x128xf32>
    %cst_12 = arith.constant 5.000000e-01 : f32
    %20 = vector.broadcast %cst_12 : f32 to vector<32x128xf32>
    %21 = arith.mulf %20, %19 : vector<32x128xf32>
    %22 = math.tanh %21 : vector<32x128xf32>
    %cst_13 = arith.constant 5.000000e-01 : f32
    %23 = vector.broadcast %cst_13 : f32 to vector<32x128xf32>
    %24 = arith.mulf %23, %22 : vector<32x128xf32>
    %cst_14 = arith.constant 5.000000e-01 : f32
    %25 = vector.broadcast %cst_14 : f32 to vector<32x128xf32>
    %26 = arith.addf %24, %25 : vector<32x128xf32>
    %27 = vector.extract_strided_slice %18 {offsets = [32, 0], sizes = [32, 128], strides = [1, 1]} : vector<128x128xf32> to vector<32x128xf32>
    %cst_15 = arith.constant 5.000000e-01 : f32
    %28 = vector.broadcast %cst_15 : f32 to vector<32x128xf32>
    %29 = arith.mulf %28, %27 : vector<32x128xf32>
    %30 = math.tanh %29 : vector<32x128xf32>
    %cst_16 = arith.constant 5.000000e-01 : f32
    %31 = vector.broadcast %cst_16 : f32 to vector<32x128xf32>
    %32 = arith.mulf %31, %30 : vector<32x128xf32>
    %cst_17 = arith.constant 5.000000e-01 : f32
    %33 = vector.broadcast %cst_17 : f32 to vector<32x128xf32>
    %34 = arith.addf %32, %33 : vector<32x128xf32>
    %35 = vector.extract_strided_slice %18 {offsets = [64, 0], sizes = [32, 128], strides = [1, 1]} : vector<128x128xf32> to vector<32x128xf32>
    %36 = math.tanh %35 : vector<32x128xf32>
    %37 = vector.extract_strided_slice %18 {offsets = [96, 0], sizes = [32, 128], strides = [1, 1]} : vector<128x128xf32> to vector<32x128xf32>
    %cst_18 = arith.constant 5.000000e-01 : f32
    %38 = vector.broadcast %cst_18 : f32 to vector<32x128xf32>
    %39 = arith.mulf %38, %37 : vector<32x128xf32>
    %40 = math.tanh %39 : vector<32x128xf32>
    %cst_19 = arith.constant 5.000000e-01 : f32
    %41 = vector.broadcast %cst_19 : f32 to vector<32x128xf32>
    %42 = arith.mulf %41, %40 : vector<32x128xf32>
    %cst_20 = arith.constant 5.000000e-01 : f32
    %43 = vector.broadcast %cst_20 : f32 to vector<32x128xf32>
    %44 = arith.addf %42, %43 : vector<32x128xf32>
    %45 = arith.mulf %34, %11 : vector<32x128xf32>
    %46 = arith.mulf %26, %36 : vector<32x128xf32>
    %47 = arith.addf %45, %46 : vector<32x128xf32>
    %48 = math.tanh %47 : vector<32x128xf32>
    %49 = arith.mulf %44, %48 : vector<32x128xf32>
    %c1_i32 = arith.constant 1 : i32
    %50 = arith.index_cast %c1_i32 : i32 to index
    %c0_21 = arith.constant 0 : index
    %51 = vector.load %arg2[%50, %c0_21] : memref<8x128xf32, #tpu.memory_space<vmem>>, vector<1x128xf32>
    %cst_22 = arith.constant dense<0.000000e+00> : vector<128x128xf32>
    %52 = tpu.matmul %3, %49, %cst_22 {dimension_numbers = #tpu.dot_dimension_numbers<[1], [0], [0], [1], [0, 0, 1, 1], [], []>} : vector<128x32xf32>, vector<32x128xf32>, vector<128x128xf32> -> vector<128x128xf32>
    %53 = vector.broadcast %51 : vector<1x128xf32> to vector<128x128xf32>
    %54 = arith.mulf %6, %53 : vector<128x128xf32>
    %55 = arith.addf %52, %54 : vector<128x128xf32>
    %56 = arith.addf %55, %9 : vector<128x128xf32>
    %57 = vector.extract_strided_slice %56 {offsets = [0, 0], sizes = [32, 128], strides = [1, 1]} : vector<128x128xf32> to vector<32x128xf32>
    %cst_23 = arith.constant 5.000000e-01 : f32
    %58 = vector.broadcast %cst_23 : f32 to vector<32x128xf32>
    %59 = arith.mulf %58, %57 : vector<32x128xf32>
    %60 = math.tanh %59 : vector<32x128xf32>
    %cst_24 = arith.constant 5.000000e-01 : f32
    %61 = vector.broadcast %cst_24 : f32 to vector<32x128xf32>
    %62 = arith.mulf %61, %60 : vector<32x128xf32>
    %cst_25 = arith.constant 5.000000e-01 : f32
    %63 = vector.broadcast %cst_25 : f32 to vector<32x128xf32>
    %64 = arith.addf %62, %63 : vector<32x128xf32>
    %65 = vector.extract_strided_slice %56 {offsets = [32, 0], sizes = [32, 128], strides = [1, 1]} : vector<128x128xf32> to vector<32x128xf32>
    %cst_26 = arith.constant 5.000000e-01 : f32
    %66 = vector.broadcast %cst_26 : f32 to vector<32x128xf32>
    %67 = arith.mulf %66, %65 : vector<32x128xf32>
    %68 = math.tanh %67 : vector<32x128xf32>
    %cst_27 = arith.constant 5.000000e-01 : f32
    %69 = vector.broadcast %cst_27 : f32 to vector<32x128xf32>
    %70 = arith.mulf %69, %68 : vector<32x128xf32>
    %cst_28 = arith.constant 5.000000e-01 : f32
    %71 = vector.broadcast %cst_28 : f32 to vector<32x128xf32>
    %72 = arith.addf %70, %71 : vector<32x128xf32>
    %73 = vector.extract_strided_slice %56 {offsets = [64, 0], sizes = [32, 128], strides = [1, 1]} : vector<128x128xf32> to vector<32x128xf32>
    %74 = math.tanh %73 : vector<32x128xf32>
    %75 = vector.extract_strided_slice %56 {offsets = [96, 0], sizes = [32, 128], strides = [1, 1]} : vector<128x128xf32> to vector<32x128xf32>
    %cst_29 = arith.constant 5.000000e-01 : f32
    %76 = vector.broadcast %cst_29 : f32 to vector<32x128xf32>
    %77 = arith.mulf %76, %75 : vector<32x128xf32>
    %78 = math.tanh %77 : vector<32x128xf32>
    %cst_30 = arith.constant 5.000000e-01 : f32
    %79 = vector.broadcast %cst_30 : f32 to vector<32x128xf32>
    %80 = arith.mulf %79, %78 : vector<32x128xf32>
    %cst_31 = arith.constant 5.000000e-01 : f32
    %81 = vector.broadcast %cst_31 : f32 to vector<32x128xf32>
    %82 = arith.addf %80, %81 : vector<32x128xf32>
    %83 = arith.mulf %72, %47 : vector<32x128xf32>
    %84 = arith.mulf %64, %74 : vector<32x128xf32>
    %85 = arith.addf %83, %84 : vector<32x128xf32>
    %86 = math.tanh %85 : vector<32x128xf32>
    %87 = arith.mulf %82, %86 : vector<32x128xf32>
    %c2_i32 = arith.constant 2 : i32
    %88 = arith.index_cast %c2_i32 : i32 to index
    %c0_32 = arith.constant 0 : index
    %89 = vector.load %arg2[%88, %c0_32] : memref<8x128xf32, #tpu.memory_space<vmem>>, vector<1x128xf32>
    %cst_33 = arith.constant dense<0.000000e+00> : vector<128x128xf32>
    %90 = tpu.matmul %3, %87, %cst_33 {dimension_numbers = #tpu.dot_dimension_numbers<[1], [0], [0], [1], [0, 0, 1, 1], [], []>} : vector<128x32xf32>, vector<32x128xf32>, vector<128x128xf32> -> vector<128x128xf32>
    %91 = vector.broadcast %89 : vector<1x128xf32> to vector<128x128xf32>
    %92 = arith.mulf %6, %91 : vector<128x128xf32>
    %93 = arith.addf %90, %92 : vector<128x128xf32>
    %94 = arith.addf %93, %9 : vector<128x128xf32>
    %95 = vector.extract_strided_slice %94 {offsets = [0, 0], sizes = [32, 128], strides = [1, 1]} : vector<128x128xf32> to vector<32x128xf32>
    %cst_34 = arith.constant 5.000000e-01 : f32
    %96 = vector.broadcast %cst_34 : f32 to vector<32x128xf32>
    %97 = arith.mulf %96, %95 : vector<32x128xf32>
    %98 = math.tanh %97 : vector<32x128xf32>
    %cst_35 = arith.constant 5.000000e-01 : f32
    %99 = vector.broadcast %cst_35 : f32 to vector<32x128xf32>
    %100 = arith.mulf %99, %98 : vector<32x128xf32>
    %cst_36 = arith.constant 5.000000e-01 : f32
    %101 = vector.broadcast %cst_36 : f32 to vector<32x128xf32>
    %102 = arith.addf %100, %101 : vector<32x128xf32>
    %103 = vector.extract_strided_slice %94 {offsets = [32, 0], sizes = [32, 128], strides = [1, 1]} : vector<128x128xf32> to vector<32x128xf32>
    %cst_37 = arith.constant 5.000000e-01 : f32
    %104 = vector.broadcast %cst_37 : f32 to vector<32x128xf32>
    %105 = arith.mulf %104, %103 : vector<32x128xf32>
    %106 = math.tanh %105 : vector<32x128xf32>
    %cst_38 = arith.constant 5.000000e-01 : f32
    %107 = vector.broadcast %cst_38 : f32 to vector<32x128xf32>
    %108 = arith.mulf %107, %106 : vector<32x128xf32>
    %cst_39 = arith.constant 5.000000e-01 : f32
    %109 = vector.broadcast %cst_39 : f32 to vector<32x128xf32>
    %110 = arith.addf %108, %109 : vector<32x128xf32>
    %111 = vector.extract_strided_slice %94 {offsets = [64, 0], sizes = [32, 128], strides = [1, 1]} : vector<128x128xf32> to vector<32x128xf32>
    %112 = math.tanh %111 : vector<32x128xf32>
    %113 = vector.extract_strided_slice %94 {offsets = [96, 0], sizes = [32, 128], strides = [1, 1]} : vector<128x128xf32> to vector<32x128xf32>
    %cst_40 = arith.constant 5.000000e-01 : f32
    %114 = vector.broadcast %cst_40 : f32 to vector<32x128xf32>
    %115 = arith.mulf %114, %113 : vector<32x128xf32>
    %116 = math.tanh %115 : vector<32x128xf32>
    %cst_41 = arith.constant 5.000000e-01 : f32
    %117 = vector.broadcast %cst_41 : f32 to vector<32x128xf32>
    %118 = arith.mulf %117, %116 : vector<32x128xf32>
    %cst_42 = arith.constant 5.000000e-01 : f32
    %119 = vector.broadcast %cst_42 : f32 to vector<32x128xf32>
    %120 = arith.addf %118, %119 : vector<32x128xf32>
    %121 = arith.mulf %110, %85 : vector<32x128xf32>
    %122 = arith.mulf %102, %112 : vector<32x128xf32>
    %123 = arith.addf %121, %122 : vector<32x128xf32>
    %124 = math.tanh %123 : vector<32x128xf32>
    %125 = arith.mulf %120, %124 : vector<32x128xf32>
    %c3_i32 = arith.constant 3 : i32
    %126 = arith.index_cast %c3_i32 : i32 to index
    %c0_43 = arith.constant 0 : index
    %127 = vector.load %arg2[%126, %c0_43] : memref<8x128xf32, #tpu.memory_space<vmem>>, vector<1x128xf32>
    %cst_44 = arith.constant dense<0.000000e+00> : vector<128x128xf32>
    %128 = tpu.matmul %3, %125, %cst_44 {dimension_numbers = #tpu.dot_dimension_numbers<[1], [0], [0], [1], [0, 0, 1, 1], [], []>} : vector<128x32xf32>, vector<32x128xf32>, vector<128x128xf32> -> vector<128x128xf32>
    %129 = vector.broadcast %127 : vector<1x128xf32> to vector<128x128xf32>
    %130 = arith.mulf %6, %129 : vector<128x128xf32>
    %131 = arith.addf %128, %130 : vector<128x128xf32>
    %132 = arith.addf %131, %9 : vector<128x128xf32>
    %133 = vector.extract_strided_slice %132 {offsets = [0, 0], sizes = [32, 128], strides = [1, 1]} : vector<128x128xf32> to vector<32x128xf32>
    %cst_45 = arith.constant 5.000000e-01 : f32
    %134 = vector.broadcast %cst_45 : f32 to vector<32x128xf32>
    %135 = arith.mulf %134, %133 : vector<32x128xf32>
    %136 = math.tanh %135 : vector<32x128xf32>
    %cst_46 = arith.constant 5.000000e-01 : f32
    %137 = vector.broadcast %cst_46 : f32 to vector<32x128xf32>
    %138 = arith.mulf %137, %136 : vector<32x128xf32>
    %cst_47 = arith.constant 5.000000e-01 : f32
    %139 = vector.broadcast %cst_47 : f32 to vector<32x128xf32>
    %140 = arith.addf %138, %139 : vector<32x128xf32>
    %141 = vector.extract_strided_slice %132 {offsets = [32, 0], sizes = [32, 128], strides = [1, 1]} : vector<128x128xf32> to vector<32x128xf32>
    %cst_48 = arith.constant 5.000000e-01 : f32
    %142 = vector.broadcast %cst_48 : f32 to vector<32x128xf32>
    %143 = arith.mulf %142, %141 : vector<32x128xf32>
    %144 = math.tanh %143 : vector<32x128xf32>
    %cst_49 = arith.constant 5.000000e-01 : f32
    %145 = vector.broadcast %cst_49 : f32 to vector<32x128xf32>
    %146 = arith.mulf %145, %144 : vector<32x128xf32>
    %cst_50 = arith.constant 5.000000e-01 : f32
    %147 = vector.broadcast %cst_50 : f32 to vector<32x128xf32>
    %148 = arith.addf %146, %147 : vector<32x128xf32>
    %149 = vector.extract_strided_slice %132 {offsets = [64, 0], sizes = [32, 128], strides = [1, 1]} : vector<128x128xf32> to vector<32x128xf32>
    %150 = math.tanh %149 : vector<32x128xf32>
    %151 = vector.extract_strided_slice %132 {offsets = [96, 0], sizes = [32, 128], strides = [1, 1]} : vector<128x128xf32> to vector<32x128xf32>
    %cst_51 = arith.constant 5.000000e-01 : f32
    %152 = vector.broadcast %cst_51 : f32 to vector<32x128xf32>
    %153 = arith.mulf %152, %151 : vector<32x128xf32>
    %154 = math.tanh %153 : vector<32x128xf32>
    %cst_52 = arith.constant 5.000000e-01 : f32
    %155 = vector.broadcast %cst_52 : f32 to vector<32x128xf32>
    %156 = arith.mulf %155, %154 : vector<32x128xf32>
    %cst_53 = arith.constant 5.000000e-01 : f32
    %157 = vector.broadcast %cst_53 : f32 to vector<32x128xf32>
    %158 = arith.addf %156, %157 : vector<32x128xf32>
    %159 = arith.mulf %148, %123 : vector<32x128xf32>
    %160 = arith.mulf %140, %150 : vector<32x128xf32>
    %161 = arith.addf %159, %160 : vector<32x128xf32>
    %162 = math.tanh %161 : vector<32x128xf32>
    %163 = arith.mulf %158, %162 : vector<32x128xf32>
    %c4_i32 = arith.constant 4 : i32
    %164 = arith.index_cast %c4_i32 : i32 to index
    %c0_54 = arith.constant 0 : index
    %165 = vector.load %arg2[%164, %c0_54] : memref<8x128xf32, #tpu.memory_space<vmem>>, vector<1x128xf32>
    %cst_55 = arith.constant dense<0.000000e+00> : vector<128x128xf32>
    %166 = tpu.matmul %3, %163, %cst_55 {dimension_numbers = #tpu.dot_dimension_numbers<[1], [0], [0], [1], [0, 0, 1, 1], [], []>} : vector<128x32xf32>, vector<32x128xf32>, vector<128x128xf32> -> vector<128x128xf32>
    %167 = vector.broadcast %165 : vector<1x128xf32> to vector<128x128xf32>
    %168 = arith.mulf %6, %167 : vector<128x128xf32>
    %169 = arith.addf %166, %168 : vector<128x128xf32>
    %170 = arith.addf %169, %9 : vector<128x128xf32>
    %171 = vector.extract_strided_slice %170 {offsets = [0, 0], sizes = [32, 128], strides = [1, 1]} : vector<128x128xf32> to vector<32x128xf32>
    %cst_56 = arith.constant 5.000000e-01 : f32
    %172 = vector.broadcast %cst_56 : f32 to vector<32x128xf32>
    %173 = arith.mulf %172, %171 : vector<32x128xf32>
    %174 = math.tanh %173 : vector<32x128xf32>
    %cst_57 = arith.constant 5.000000e-01 : f32
    %175 = vector.broadcast %cst_57 : f32 to vector<32x128xf32>
    %176 = arith.mulf %175, %174 : vector<32x128xf32>
    %cst_58 = arith.constant 5.000000e-01 : f32
    %177 = vector.broadcast %cst_58 : f32 to vector<32x128xf32>
    %178 = arith.addf %176, %177 : vector<32x128xf32>
    %179 = vector.extract_strided_slice %170 {offsets = [32, 0], sizes = [32, 128], strides = [1, 1]} : vector<128x128xf32> to vector<32x128xf32>
    %cst_59 = arith.constant 5.000000e-01 : f32
    %180 = vector.broadcast %cst_59 : f32 to vector<32x128xf32>
    %181 = arith.mulf %180, %179 : vector<32x128xf32>
    %182 = math.tanh %181 : vector<32x128xf32>
    %cst_60 = arith.constant 5.000000e-01 : f32
    %183 = vector.broadcast %cst_60 : f32 to vector<32x128xf32>
    %184 = arith.mulf %183, %182 : vector<32x128xf32>
    %cst_61 = arith.constant 5.000000e-01 : f32
    %185 = vector.broadcast %cst_61 : f32 to vector<32x128xf32>
    %186 = arith.addf %184, %185 : vector<32x128xf32>
    %187 = vector.extract_strided_slice %170 {offsets = [64, 0], sizes = [32, 128], strides = [1, 1]} : vector<128x128xf32> to vector<32x128xf32>
    %188 = math.tanh %187 : vector<32x128xf32>
    %189 = vector.extract_strided_slice %170 {offsets = [96, 0], sizes = [32, 128], strides = [1, 1]} : vector<128x128xf32> to vector<32x128xf32>
    %cst_62 = arith.constant 5.000000e-01 : f32
    %190 = vector.broadcast %cst_62 : f32 to vector<32x128xf32>
    %191 = arith.mulf %190, %189 : vector<32x128xf32>
    %192 = math.tanh %191 : vector<32x128xf32>
    %cst_63 = arith.constant 5.000000e-01 : f32
    %193 = vector.broadcast %cst_63 : f32 to vector<32x128xf32>
    %194 = arith.mulf %193, %192 : vector<32x128xf32>
    %cst_64 = arith.constant 5.000000e-01 : f32
    %195 = vector.broadcast %cst_64 : f32 to vector<32x128xf32>
    %196 = arith.addf %194, %195 : vector<32x128xf32>
    %197 = arith.mulf %186, %161 : vector<32x128xf32>
    %198 = arith.mulf %178, %188 : vector<32x128xf32>
    %199 = arith.addf %197, %198 : vector<32x128xf32>
    %200 = math.tanh %199 : vector<32x128xf32>
    %201 = arith.mulf %196, %200 : vector<32x128xf32>
    %c5_i32 = arith.constant 5 : i32
    %202 = arith.index_cast %c5_i32 : i32 to index
    %c0_65 = arith.constant 0 : index
    %203 = vector.load %arg2[%202, %c0_65] : memref<8x128xf32, #tpu.memory_space<vmem>>, vector<1x128xf32>
    %cst_66 = arith.constant dense<0.000000e+00> : vector<128x128xf32>
    %204 = tpu.matmul %3, %201, %cst_66 {dimension_numbers = #tpu.dot_dimension_numbers<[1], [0], [0], [1], [0, 0, 1, 1], [], []>} : vector<128x32xf32>, vector<32x128xf32>, vector<128x128xf32> -> vector<128x128xf32>
    %205 = vector.broadcast %203 : vector<1x128xf32> to vector<128x128xf32>
    %206 = arith.mulf %6, %205 : vector<128x128xf32>
    %207 = arith.addf %204, %206 : vector<128x128xf32>
    %208 = arith.addf %207, %9 : vector<128x128xf32>
    %209 = vector.extract_strided_slice %208 {offsets = [0, 0], sizes = [32, 128], strides = [1, 1]} : vector<128x128xf32> to vector<32x128xf32>
    %cst_67 = arith.constant 5.000000e-01 : f32
    %210 = vector.broadcast %cst_67 : f32 to vector<32x128xf32>
    %211 = arith.mulf %210, %209 : vector<32x128xf32>
    %212 = math.tanh %211 : vector<32x128xf32>
    %cst_68 = arith.constant 5.000000e-01 : f32
    %213 = vector.broadcast %cst_68 : f32 to vector<32x128xf32>
    %214 = arith.mulf %213, %212 : vector<32x128xf32>
    %cst_69 = arith.constant 5.000000e-01 : f32
    %215 = vector.broadcast %cst_69 : f32 to vector<32x128xf32>
    %216 = arith.addf %214, %215 : vector<32x128xf32>
    %217 = vector.extract_strided_slice %208 {offsets = [32, 0], sizes = [32, 128], strides = [1, 1]} : vector<128x128xf32> to vector<32x128xf32>
    %cst_70 = arith.constant 5.000000e-01 : f32
    %218 = vector.broadcast %cst_70 : f32 to vector<32x128xf32>
    %219 = arith.mulf %218, %217 : vector<32x128xf32>
    %220 = math.tanh %219 : vector<32x128xf32>
    %cst_71 = arith.constant 5.000000e-01 : f32
    %221 = vector.broadcast %cst_71 : f32 to vector<32x128xf32>
    %222 = arith.mulf %221, %220 : vector<32x128xf32>
    %cst_72 = arith.constant 5.000000e-01 : f32
    %223 = vector.broadcast %cst_72 : f32 to vector<32x128xf32>
    %224 = arith.addf %222, %223 : vector<32x128xf32>
    %225 = vector.extract_strided_slice %208 {offsets = [64, 0], sizes = [32, 128], strides = [1, 1]} : vector<128x128xf32> to vector<32x128xf32>
    %226 = math.tanh %225 : vector<32x128xf32>
    %227 = vector.extract_strided_slice %208 {offsets = [96, 0], sizes = [32, 128], strides = [1, 1]} : vector<128x128xf32> to vector<32x128xf32>
    %cst_73 = arith.constant 5.000000e-01 : f32
    %228 = vector.broadcast %cst_73 : f32 to vector<32x128xf32>
    %229 = arith.mulf %228, %227 : vector<32x128xf32>
    %230 = math.tanh %229 : vector<32x128xf32>
    %cst_74 = arith.constant 5.000000e-01 : f32
    %231 = vector.broadcast %cst_74 : f32 to vector<32x128xf32>
    %232 = arith.mulf %231, %230 : vector<32x128xf32>
    %cst_75 = arith.constant 5.000000e-01 : f32
    %233 = vector.broadcast %cst_75 : f32 to vector<32x128xf32>
    %234 = arith.addf %232, %233 : vector<32x128xf32>
    %235 = arith.mulf %224, %199 : vector<32x128xf32>
    %236 = arith.mulf %216, %226 : vector<32x128xf32>
    %237 = arith.addf %235, %236 : vector<32x128xf32>
    %238 = math.tanh %237 : vector<32x128xf32>
    %239 = arith.mulf %234, %238 : vector<32x128xf32>
    %c6_i32 = arith.constant 6 : i32
    %240 = arith.index_cast %c6_i32 : i32 to index
    %c0_76 = arith.constant 0 : index
    %241 = vector.load %arg2[%240, %c0_76] : memref<8x128xf32, #tpu.memory_space<vmem>>, vector<1x128xf32>
    %cst_77 = arith.constant dense<0.000000e+00> : vector<128x128xf32>
    %242 = tpu.matmul %3, %239, %cst_77 {dimension_numbers = #tpu.dot_dimension_numbers<[1], [0], [0], [1], [0, 0, 1, 1], [], []>} : vector<128x32xf32>, vector<32x128xf32>, vector<128x128xf32> -> vector<128x128xf32>
    %243 = vector.broadcast %241 : vector<1x128xf32> to vector<128x128xf32>
    %244 = arith.mulf %6, %243 : vector<128x128xf32>
    %245 = arith.addf %242, %244 : vector<128x128xf32>
    %246 = arith.addf %245, %9 : vector<128x128xf32>
    %247 = vector.extract_strided_slice %246 {offsets = [0, 0], sizes = [32, 128], strides = [1, 1]} : vector<128x128xf32> to vector<32x128xf32>
    %cst_78 = arith.constant 5.000000e-01 : f32
    %248 = vector.broadcast %cst_78 : f32 to vector<32x128xf32>
    %249 = arith.mulf %248, %247 : vector<32x128xf32>
    %250 = math.tanh %249 : vector<32x128xf32>
    %cst_79 = arith.constant 5.000000e-01 : f32
    %251 = vector.broadcast %cst_79 : f32 to vector<32x128xf32>
    %252 = arith.mulf %251, %250 : vector<32x128xf32>
    %cst_80 = arith.constant 5.000000e-01 : f32
    %253 = vector.broadcast %cst_80 : f32 to vector<32x128xf32>
    %254 = arith.addf %252, %253 : vector<32x128xf32>
    %255 = vector.extract_strided_slice %246 {offsets = [32, 0], sizes = [32, 128], strides = [1, 1]} : vector<128x128xf32> to vector<32x128xf32>
    %cst_81 = arith.constant 5.000000e-01 : f32
    %256 = vector.broadcast %cst_81 : f32 to vector<32x128xf32>
    %257 = arith.mulf %256, %255 : vector<32x128xf32>
    %258 = math.tanh %257 : vector<32x128xf32>
    %cst_82 = arith.constant 5.000000e-01 : f32
    %259 = vector.broadcast %cst_82 : f32 to vector<32x128xf32>
    %260 = arith.mulf %259, %258 : vector<32x128xf32>
    %cst_83 = arith.constant 5.000000e-01 : f32
    %261 = vector.broadcast %cst_83 : f32 to vector<32x128xf32>
    %262 = arith.addf %260, %261 : vector<32x128xf32>
    %263 = vector.extract_strided_slice %246 {offsets = [64, 0], sizes = [32, 128], strides = [1, 1]} : vector<128x128xf32> to vector<32x128xf32>
    %264 = math.tanh %263 : vector<32x128xf32>
    %265 = vector.extract_strided_slice %246 {offsets = [96, 0], sizes = [32, 128], strides = [1, 1]} : vector<128x128xf32> to vector<32x128xf32>
    %cst_84 = arith.constant 5.000000e-01 : f32
    %266 = vector.broadcast %cst_84 : f32 to vector<32x128xf32>
    %267 = arith.mulf %266, %265 : vector<32x128xf32>
    %268 = math.tanh %267 : vector<32x128xf32>
    %cst_85 = arith.constant 5.000000e-01 : f32
    %269 = vector.broadcast %cst_85 : f32 to vector<32x128xf32>
    %270 = arith.mulf %269, %268 : vector<32x128xf32>
    %cst_86 = arith.constant 5.000000e-01 : f32
    %271 = vector.broadcast %cst_86 : f32 to vector<32x128xf32>
    %272 = arith.addf %270, %271 : vector<32x128xf32>
    %273 = arith.mulf %262, %237 : vector<32x128xf32>
    %274 = arith.mulf %254, %264 : vector<32x128xf32>
    %275 = arith.addf %273, %274 : vector<32x128xf32>
    %276 = math.tanh %275 : vector<32x128xf32>
    %277 = arith.mulf %272, %276 : vector<32x128xf32>
    %c7_i32 = arith.constant 7 : i32
    %278 = arith.index_cast %c7_i32 : i32 to index
    %c0_87 = arith.constant 0 : index
    %279 = vector.load %arg2[%278, %c0_87] : memref<8x128xf32, #tpu.memory_space<vmem>>, vector<1x128xf32>
    %cst_88 = arith.constant dense<0.000000e+00> : vector<128x128xf32>
    %280 = tpu.matmul %3, %277, %cst_88 {dimension_numbers = #tpu.dot_dimension_numbers<[1], [0], [0], [1], [0, 0, 1, 1], [], []>} : vector<128x32xf32>, vector<32x128xf32>, vector<128x128xf32> -> vector<128x128xf32>
    %281 = vector.broadcast %279 : vector<1x128xf32> to vector<128x128xf32>
    %282 = arith.mulf %6, %281 : vector<128x128xf32>
    %283 = arith.addf %280, %282 : vector<128x128xf32>
    %284 = arith.addf %283, %9 : vector<128x128xf32>
    %285 = vector.extract_strided_slice %284 {offsets = [0, 0], sizes = [32, 128], strides = [1, 1]} : vector<128x128xf32> to vector<32x128xf32>
    %cst_89 = arith.constant 5.000000e-01 : f32
    %286 = vector.broadcast %cst_89 : f32 to vector<32x128xf32>
    %287 = arith.mulf %286, %285 : vector<32x128xf32>
    %288 = math.tanh %287 : vector<32x128xf32>
    %cst_90 = arith.constant 5.000000e-01 : f32
    %289 = vector.broadcast %cst_90 : f32 to vector<32x128xf32>
    %290 = arith.mulf %289, %288 : vector<32x128xf32>
    %cst_91 = arith.constant 5.000000e-01 : f32
    %291 = vector.broadcast %cst_91 : f32 to vector<32x128xf32>
    %292 = arith.addf %290, %291 : vector<32x128xf32>
    %293 = vector.extract_strided_slice %284 {offsets = [32, 0], sizes = [32, 128], strides = [1, 1]} : vector<128x128xf32> to vector<32x128xf32>
    %cst_92 = arith.constant 5.000000e-01 : f32
    %294 = vector.broadcast %cst_92 : f32 to vector<32x128xf32>
    %295 = arith.mulf %294, %293 : vector<32x128xf32>
    %296 = math.tanh %295 : vector<32x128xf32>
    %cst_93 = arith.constant 5.000000e-01 : f32
    %297 = vector.broadcast %cst_93 : f32 to vector<32x128xf32>
    %298 = arith.mulf %297, %296 : vector<32x128xf32>
    %cst_94 = arith.constant 5.000000e-01 : f32
    %299 = vector.broadcast %cst_94 : f32 to vector<32x128xf32>
    %300 = arith.addf %298, %299 : vector<32x128xf32>
    %301 = vector.extract_strided_slice %284 {offsets = [64, 0], sizes = [32, 128], strides = [1, 1]} : vector<128x128xf32> to vector<32x128xf32>
    %302 = math.tanh %301 : vector<32x128xf32>
    %303 = vector.extract_strided_slice %284 {offsets = [96, 0], sizes = [32, 128], strides = [1, 1]} : vector<128x128xf32> to vector<32x128xf32>
    %cst_95 = arith.constant 5.000000e-01 : f32
    %304 = vector.broadcast %cst_95 : f32 to vector<32x128xf32>
    %305 = arith.mulf %304, %303 : vector<32x128xf32>
    %306 = math.tanh %305 : vector<32x128xf32>
    %cst_96 = arith.constant 5.000000e-01 : f32
    %307 = vector.broadcast %cst_96 : f32 to vector<32x128xf32>
    %308 = arith.mulf %307, %306 : vector<32x128xf32>
    %cst_97 = arith.constant 5.000000e-01 : f32
    %309 = vector.broadcast %cst_97 : f32 to vector<32x128xf32>
    %310 = arith.addf %308, %309 : vector<32x128xf32>
    %311 = arith.mulf %300, %275 : vector<32x128xf32>
    %312 = arith.mulf %292, %302 : vector<32x128xf32>
    %313 = arith.addf %311, %312 : vector<32x128xf32>
    %314 = math.tanh %313 : vector<32x128xf32>
    %315 = arith.mulf %310, %314 : vector<32x128xf32>
    %c8_i32 = arith.constant 8 : i32
    %c0_98 = arith.constant 0 : index
    %c0_99 = arith.constant 0 : index
    %316 = vector.load %arg7[%c0_98, %c0_99] : memref<32x128xf32, #tpu.memory_space<vmem>>, vector<32x128xf32>
    tpu.vector_store %arg7[%c0_98, %c0_99], %315 {strides = array<i32>} : memref<32x128xf32, #tpu.memory_space<vmem>>, vector<32x128xf32>,
    %c0_100 = arith.constant 0 : index
    %c0_101 = arith.constant 0 : index
    %317 = vector.load %arg8[%c0_100, %c0_101] : memref<32x128xf32, #tpu.memory_space<vmem>>, vector<32x128xf32>
    tpu.vector_store %arg8[%c0_100, %c0_101], %313 {strides = array<i32>} : memref<32x128xf32, #tpu.memory_space<vmem>>, vector<32x128xf32>,
    %c0_i32_102 = arith.constant 0 : i32
    %318 = arith.cmpi eq, %arg1, %c0_i32_102 : i32
    %319 = arith.extui %318 : i1 to i32
    %c0_i32_103 = arith.constant 0 : i32
    %320 = arith.cmpi ne, %319, %c0_i32_103 : i32
    scf.if %320 {
      %c0_104 = arith.constant 0 : index
      %c0_105 = arith.constant 0 : index
      %321 = vector.load %arg7[%c0_104, %c0_105] : memref<32x128xf32, #tpu.memory_space<vmem>>, vector<32x128xf32>
      %c0_106 = arith.constant 0 : index
      %c0_107 = arith.constant 0 : index
      %322 = vector.load %arg6[%c0_106, %c0_107] : memref<32x128xf32, #tpu.memory_space<vmem>>, vector<32x128xf32>
      tpu.vector_store %arg6[%c0_106, %c0_107], %321 {strides = array<i32>} : memref<32x128xf32, #tpu.memory_space<vmem>>, vector<32x128xf32>,
    } else {
    }
    return
  }
  func.func @transform_0(%arg0: i32, %arg1: i32) -> (i32, i32) {
    %c0_i32 = arith.constant 0 : i32
    return %arg1, %arg0 : i32, i32
  }
  func.func @transform_1(%arg0: i32, %arg1: i32) -> (i32, i32) {
    %c0_i32 = arith.constant 0 : i32
    %c0_i32_0 = arith.constant 0 : i32
    %c0_i32_1 = arith.constant 0 : i32
    return %c0_i32, %c0_i32_0 : i32, i32
  }
  func.func @transform_2(%arg0: i32, %arg1: i32) -> (i32, i32) {
    %c0_i32 = arith.constant 0 : i32
    %c0_i32_0 = arith.constant 0 : i32
    %c0_i32_1 = arith.constant 0 : i32
    return %c0_i32, %c0_i32_0 : i32, i32
  }
  func.func @transform_3(%arg0: i32, %arg1: i32) -> (i32, i32) {
    %c0_i32 = arith.constant 0 : i32
    %c0_i32_0 = arith.constant 0 : i32
    %c0_i32_1 = arith.constant 0 : i32
    return %c0_i32, %c0_i32_0 : i32, i32
  }
  func.func @transform_4(%arg0: i32, %arg1: i32) -> (i32, i32) {
    %c0_i32 = arith.constant 0 : i32
    %c0_i32_0 = arith.constant 0 : i32
    return %c0_i32, %arg0 : i32, i32
  }
}

</mosaic_0001>

<bundles_post_ra>
// kernel: tpu_custom_call.1
= control target key start
LH: loop header
LB: loop body
LE: loop exit
PB: predicated region body
PF: predicated region fallthrough
CT: control target
= control target key end

     0   :  { %v3285_v2 = vmov 0.0   ;;  %v3286_v3 = vmov 0   ;;  %vm267_vm0 = vcmask 261120   ;;  %s4505_s0 = inlined_call_operand.vmem [shape: f32[8,128], index: 0, kind: input, shape index: {}]   ;;  %s4506_s1 = inlined_call_operand.vmem [shape: f32[128,32], index: 1, kind: input, shape index: {}]   ;;  %s4507_s2 = inlined_call_operand.vmem [shape: f32[128,1], index: 2, kind: input, shape index: {}]   ;;  %s4508_s3 = inlined_call_operand.vmem [shape: f32[128,1], index: 3, kind: input, shape index: {}]   ;;  %s4509_s4 = inlined_call_operand.hbm [shape: f32[32,128], index: 4, kind: output, shape index: {}]  }
   0x1   :  { %v49_v0 = vld [vmem:[%s4507_s2 + $0x18] sm:$0xff]  ;;  %v48_v1 = vld [vmem:[%s4507_s2 + $0x10] sm:$0xff]  ;;  %2655 = vmatprep.subr.mxu0 %v3285_v2  ;;  %2911 = vset.pattern.permute.xlu1 %v3286_v3  ;;  %v3324_v4 = vld [vmem:[%s4506_s1] sm:$0xff] }
   0x2   :  { %2910 = vset.pattern.permute.xlu0 %v3286_v3  ;;  %2656 = vmatpush3.msra.mxu0 %v3285_v2  ;;  %v3329_v5 = vld [vmem:[%s4506_s1 + $0x8] sm:$0xff]  ;;  %v3334_v6 = vld [vmem:[%s4506_s1 + $0x10] sm:$0xff]  ;;  %v53_v7 = vld [vmem:[%s4507_s2 + $0x38] sm:$0xff] }
   0x3   :  { %79 = vperm.xlu0 %2910, %v49_v0   ;;  %74 = vperm.xlu1 %2911, %v48_v1   ;;  %v52_v8 = vld [vmem:[%s4507_s2 + $0x30] sm:$0xff]  ;;  %v3353_v9 = vld [vmem:[%s4506_s1 + $0x18] sm:$0xff]  ;;  %v3358_v10 = vld [vmem:[%s4506_s1 + $0x20] sm:$0xff] }
   0x4   :  { %2657 = vmatprep.mubr.msk.f32.mxu0 %vm267_vm0, %v3324_v4  ;;  %2689 = vmatprep.mubr.msk.f32.mxu1 %vm267_vm0, %v3324_v4  ;;  %v51_v11 = vld [vmem:[%s4507_s2 + $0x28] sm:$0xff]  ;;  %v3378_v14 = vld [vmem:[%s4506_s1 + $0x30] sm:$0xff]  ;;  %v149_v15 = vld [vmem:[%s4508_s3 + $0x38] sm:$0xff] }
   0x5   :  { %2658 = vmatmul.mubr.msk.f32.vlgmr.msra.gmra.mxu0 %vm267_vm0, %v3329_v5  ;;  %v47_v12 = vld [vmem:[%s4507_s2 + $0x8] sm:$0xff]  ;;  %v145_v16 = vld [vmem:[%s4508_s3 + $0x18] sm:$0xff]  ;;  %v3398_v18 = vld [vmem:[%s4506_s1 + $0x40] sm:$0xff] }
   0x6   :  { %2660 = vmatprep.mubr.msk.f32.mxu0 %vm267_vm0, %v3334_v6  ;;  %v3373_v13 = vld [vmem:[%s4506_s1 + $0x28] sm:$0xff]  ;;  %v3393_v17 = vld [vmem:[%s4506_s1 + $0x38] sm:$0xff]  ;;  %v50_v19 = vld [vmem:[%s4507_s2 + $0x20] sm:$0xff] }
   0x7   :  { %99 = vperm.xlu0 %2910, %v53_v7   ;;  %94 = vperm.xlu1 %2911, %v52_v8   ;;  %v46_v20 = vld [vmem:[%s4507_s2] sm:$0xff] }
   0x9   :  { %2661 = vmatmul.mubr.msk.f32.gmra.mxu0 %vm267_vm0, %v3353_v9 }
   0xa   :  { %2663 = vmatprep.mubr.msk.f32.mxu0 %vm267_vm0, %v3358_v10 }
   0xb   :  { %89 = vperm.xlu1 %2911, %v51_v11   ;;  %69 = vperm.xlu0 %2910, %v47_v12  }
   0xd   :  { %2664 = vmatmul.mubr.msk.f32.gmra.mxu0 %vm267_vm0, %v3373_v13 }
   0xe   :  { %2666 = vmatprep.mubr.msk.f32.mxu0 %vm267_vm0, %v3378_v14 }
   0xf   :  { %195 = vperm.xlu1 %2911, %v149_v15   ;;  %175 = vperm.xlu0 %2910, %v145_v16  }
  0x10   :  { %9 = vsyncpa [#allocation5], 0  ;;  %v3413_v21 = vld [vmem:[%s4506_s1 + $0x48] sm:$0xff]  ;;  %v3418_v22 = vld [vmem:[%s4506_s1 + $0x50] sm:$0xff] }
  0x11   :  { %2667 = vmatmul.mubr.msk.f32.gmra.mxu0 %vm267_vm0, %v3393_v17  ;;  %v144_v23 = vld [vmem:[%s4508_s3 + $0x10] sm:$0xff]  ;;  %v57_v24 = vld [vmem:[%s4507_s2 + $0x58] sm:$0xff]  ;;  %v3438_v26 = vld [vmem:[%s4506_s1 + $0x60] sm:$0xff] }
  0x12   :  { %2669 = vmatprep.mubr.msk.f32.mxu0 %vm267_vm0, %v3398_v18  ;;  %v3433_v25 = vld [vmem:[%s4506_s1 + $0x58] sm:$0xff]  ;;  %v56_v27 = vld [vmem:[%s4507_s2 + $0x50] sm:$0xff]  ;;  %v3453_v29 = vld [vmem:[%s4506_s1 + $0x68] sm:$0xff] }
  0x13   :  { %84 = vperm.xlu1 %2911, %v50_v19   ;;  %64 = vperm.xlu0 %2910, %v46_v20   ;;  %v148_v28 = vld [vmem:[%s4508_s3 + $0x30] sm:$0xff]  ;;  %v147_v31 = vld [vmem:[%s4508_s3 + $0x28] sm:$0xff]  ;;  %v3473_v33 = vld [vmem:[%s4506_s1 + $0x78] sm:$0xff] }
  0x14   :  { %v3458_v30 = vld [vmem:[%s4506_s1 + $0x70] sm:$0xff]  ;;  %v143_v32 = vld [vmem:[%s4508_s3 + $0x8] sm:$0xff]  ;;  %v142_v34 = vld [vmem:[%s4508_s3] sm:$0xff] }
  0x15   :  { %2670 = vmatmul.mubr.msk.f32.gmra.mxu0 %vm267_vm0, %v3413_v21  ;;  %v55_v35 = vld [vmem:[%s4507_s2 + $0x48] sm:$0xff]  ;;  %v153_v36 = vld [vmem:[%s4508_s3 + $0x58] sm:$0xff]  ;;  %v146_v37 = vld [vmem:[%s4508_s3 + $0x20] sm:$0xff] }
  0x16   :  { %2672 = vmatprep.mubr.msk.f32.mxu0 %vm267_vm0, %v3418_v22  ;;  %v152_v38 = vld [vmem:[%s4508_s3 + $0x50] sm:$0xff]  ;;  %v54_v39 = vld [vmem:[%s4507_s2 + $0x40] sm:$0xff]  ;;  %v151_v41 = vld [vmem:[%s4508_s3 + $0x48] sm:$0xff] }
  0x17   :  { %170 = vperm.xlu1 %2911, %v144_v23   ;;  %119 = vperm.xlu0 %2910, %v57_v24   ;;  %v150_v40 = vld [vmem:[%s4508_s3 + $0x40] sm:$0xff]  ;;  %v60_v42 = vld [vmem:[%s4507_s2 + $0x70] sm:$0xff]  ;;  %v61_v43 = vld [vmem:[%s4507_s2 + $0x78] sm:$0xff] }
  0x18   :  { %v157_v44 = vld [vmem:[%s4508_s3 + $0x78] sm:$0xff]  ;;  %v59_v45 = vld [vmem:[%s4507_s2 + $0x68] sm:$0xff]  ;;  %v156_v46 = vld [vmem:[%s4508_s3 + $0x70] sm:$0xff] }
  0x19   :  { %2673 = vmatmul.mubr.msk.f32.gmra.mxu0 %vm267_vm0, %v3433_v25  ;;  %v58_v47 = vld [vmem:[%s4507_s2 + $0x60] sm:$0xff]  ;;  %v155_v49 = vld [vmem:[%s4508_s3 + $0x68] sm:$0xff] }
  0x1a   :  { %2675 = vmatprep.mubr.msk.f32.mxu0 %vm267_vm0, %v3438_v26  ;;  %v154_v48 = vld [vmem:[%s4508_s3 + $0x60] sm:$0xff] }
  0x1b   :  { %114 = vperm.xlu1 %2911, %v56_v27   ;;  %190 = vperm.xlu0 %2910, %v148_v28   ;;  %v3570_v11 = vld [vmem:[%s4505_s0] ss:$0 sm:$0xff] }
  0x1d   :  { %2676 = vmatmul.mubr.msk.f32.gmra.mxu0 %vm267_vm0, %v3453_v29 }
  0x1e   :  { %2678 = vmatprep.mubr.msk.f32.mxu0 %vm267_vm0, %v3458_v30 }
  0x1f   :  { %185 = vperm.xlu1 %2911, %v147_v31   ;;  %165 = vperm.xlu0 %2910, %v143_v32  }
  0x21   :  { %2679 = vmatmul.mubr.msk.f32.gmra.mxu0 %vm267_vm0, %v3473_v33 }
  0x22   :  { %2721 = vmatprep.mubr.msk.f32.mxu0 %vm267_vm0, %v3324_v4 }
  0x23   :  { %160 = vperm.xlu1 %2911, %v142_v34   ;;  %109 = vperm.xlu0 %2910, %v55_v35  }
  0x27   :  { %215 = vperm.xlu1 %2911, %v153_v36   ;;  %180 = vperm.xlu0 %2910, %v146_v37  }
  0x2b   :  { %210 = vperm.xlu1 %2911, %v152_v38   ;;  %104 = vperm.xlu0 %2910, %v54_v39  }
  0x2f   :  { %200 = vperm.xlu1 %2911, %v150_v40   ;;  %205 = vperm.xlu0 %2910, %v151_v41  }
  0x33   :  { %134 = vperm.xlu1 %2911, %v60_v42   ;;  %139 = vperm.xlu0 %2910, %v61_v43  }
  0x37   :  { %235 = vperm.xlu1 %2911, %v157_v44   ;;  %129 = vperm.xlu0 %2910, %v59_v45  }
  0x3b   :  { %230 = vperm.xlu1 %2911, %v156_v46   ;;  %124 = vperm.xlu0 %2910, %v58_v47  }
  0x3f   :  { %220 = vperm.xlu1 %2911, %v154_v48   ;;  %225 = vperm.xlu0 %2910, %v155_v49  }
  0x7e   :  { %v3527_v50 = vpop.permute.xlu0 %79  ;;  %v3529_v51 = vpop.permute.xlu1 %74 }
  0x7f   :  { %4593 = vst [vmem:[#allocation7_spill] sm:$0xff] %v3527_v50  ;;  %4594 = vst [vmem:[#allocation8_spill] sm:$0xff] %v3529_v51  ;;  %v254_v27 = vmul.f32 %v3570_v11, %v3527_v50  ;;  %v253_v35 = vmul.f32 %v3570_v11, %v3529_v51 }
  0x82   :  { %v3531_v52 = vpop.permute.xlu0 %99  ;;  %v3533_v53 = vpop.permute.xlu1 %94 }
  0x83   :  { %4595 = vst [vmem:[#allocation9_spill] sm:$0xff] %v3531_v52  ;;  %4596 = vst [vmem:[#allocation10_spill] sm:$0xff] %v3533_v53 }
  0x86   :  { %v3535_v54 = vpop.permute.xlu0 %69  ;;  %v3537_v55 = vpop.permute.xlu1 %89 }
  0x87   :  { %4597 = vst [vmem:[#allocation11_spill] sm:$0xff] %v3535_v54  ;;  %4598 = vst [vmem:[#allocation12_spill] sm:$0xff] %v3537_v55  ;;  %v252_v12 = vmul.f32 %v3570_v11, %v3535_v54  ;;  %v256_v38 = vmul.f32 %v3570_v11, %v3537_v55 }
  0x8a   :  { %v3539_v56 = vpop.permute.xlu0 %175  ;;  %v3541_v57 = vpop.permute.xlu1 %195 }
  0x8b   :  { %4599 = vst [vmem:[#allocation13_spill] sm:$0xff] %v3541_v57 }
  0x8e   :  { %v3543_v58 = vpop.permute.xlu0 %64  ;;  %v3545_v59 = vpop.permute.xlu1 %84 }
  0x8f   :  { %4600 = vst [vmem:[#allocation14_spill] sm:$0xff] %v3543_v58  ;;  %v251_v20 = vmul.f32 %v3570_v11, %v3543_v58  ;;  %v255_v45 = vmul.f32 %v3570_v11, %v3545_v59 }
  0x92   :  { %v3547_v60 = vpop.permute.xlu0 %119  ;;  %v3549_v61 = vpop.permute.xlu1 %170 }
  0x93   :  { %4601 = vst [vmem:[#allocation15_spill] sm:$0xff] %v3547_v60 }
  0x96   :  { %v3551_v62 = vpop.permute.xlu0 %190  ;;  %v3553_v63 = vpop.permute.xlu1 %114 }
  0x97   :  { %4602 = vst [vmem:[#allocation16_spill] sm:$0xff] %v3551_v62  ;;  %4603 = vst [vmem:[#allocation17_spill] sm:$0xff] %v3553_v63 }
  0x9a   :  { %v3555_v0 = vpop.permute.xlu0 %165  ;;  %v3557_v1 = vpop.permute.xlu1 %185 }
  0x9e   :  { %v3559_v2 = vpop.permute.xlu0 %109  ;;  %v3561_v3 = vpop.permute.xlu1 %160 }
  0x9f   :  { %4604 = vst [vmem:[#allocation18_spill] sm:$0xff] %v3559_v2 }
  0xa2   :  { %v3563_v7 = vpop.permute.xlu0 %180  ;;  %v3565_v8 = vpop.permute.xlu1 %215 }
  0xa3   :  { %4605 = vst [vmem:[#allocation19_spill] sm:$0xff] %v3563_v7  ;;  %4606 = vst [vmem:[#allocation20_spill] sm:$0xff] %v3565_v8 }
  0xa6   :  { %v3574_v16 = vpop.permute.xlu0 %104  ;;  %v3578_v24 = vpop.permute.xlu1 %210 }
  0xa7   :  { %4607 = vst [vmem:[#allocation21_spill] sm:$0xff] %v3574_v16  ;;  %4608 = vst [vmem:[#allocation22_spill] sm:$0xff] %v3578_v24 }
  0xaa   :  { %v3585_v37 = vpop.permute.xlu0 %205  ;;  %v3590_v42 = vpop.permute.xlu1 %200 }
  0xab   :  { %4609 = vst [vmem:[#allocation23_spill] sm:$0xff] %v3585_v37  ;;  %4610 = vst [vmem:[#allocation24_spill] sm:$0xff] %v3590_v42 }
  0xc5   :  { %v2659_v15 = vpop.f32.mrf.mxu0 }
  0xc6   :  { %v388_v19 = vadd.f32 %v2659_v15, %v252_v12  ;;  %v258_v12 = vmul.f32 %v3570_v11, %v3531_v52 }
  0xc7   :  { %v382_v23 = vpop.f32.mrf.mxu0 }
  0xc8   :  { %v383_v28 = vadd.f32 %v382_v23, %v251_v20  ;;  %v462_v34 = vadd.f32 %v388_v19, %v3555_v0  ;;  %v257_v23 = vmul.f32 %v3570_v11, %v3533_v53 }
  0xc9   :  { %v2662_v31 = vpop.f32.mrf.mxu0 }
  0xca   :  { %v398_v32 = vadd.f32 %v2662_v31, %v254_v27  ;;  %v461_v39 = vadd.f32 %v383_v28, %v3561_v3  ;;  %v478_v46 = vmul.f32 0.5, %v462_v34  ;;  %v3601_v27 = vpop.permute.xlu0 %139 }
  0xcb   :  { %v392_v36 = vpop.f32.mrf.mxu0  ;;  %4611 = vst [vmem:[#allocation25_spill] sm:$0xff] %v3601_v27 }
  0xcc   :  { %v393_v40 = vadd.f32 %v392_v36, %v253_v35  ;;  %v464_v43 = vadd.f32 %v398_v32, %v3539_v56  ;;  %v477_v15 = vmul.f32 0.5, %v461_v39  ;;  %2912 = vtanh.f32 %v478_v46 }
  0xcd   :  { %v2665_v41 = vpop.f32.mrf.mxu0  ;;  %v260_v36 = vmul.f32 %v3570_v11, %v3559_v2 }
  0xce   :  { %v408_v44 = vadd.f32 %v2665_v41, %v256_v38  ;;  %v463_v19 = vadd.f32 %v393_v40, %v3549_v61  ;;  %v480_v28 = vmul.f32 0.5, %v464_v43  ;;  %v3606_v38 = vpop.permute.xlu1 %134  ;;  %v259_v43 = vmul.f32 %v3570_v11, %v3574_v16 }
  0xcf   :  { %v402_v47 = vpop.f32.mrf.mxu0  ;;  %4612 = vst [vmem:[#allocation26_spill] sm:$0xff] %v3606_v38 }
  0xd0   :  { %v466_v48 = vadd.f32 %v408_v44, %v3557_v1  ;;  %v403_v49 = vadd.f32 %v402_v47, %v255_v45  ;;  %v479_v44 = vmul.f32 0.5, %v463_v19 }
  0xd1   :  { %v2668_v20 = vpop.f32.mrf.mxu0 }
  0xd2   :  { %v494_v31 = vmul.f32 0.5, %v466_v48  ;;  %v465_v32 = vadd.f32 %v403_v49, %v3563_v7  ;;  %v418_v34 = vadd.f32 %v2668_v20, %v258_v12  ;;  %v262_v12 = vmul.f32 %v3570_v11, %v3547_v60  ;;  %v3614_v20 = vpop.permute.xlu0 %129 }
  0xd3   :  { %v412_v35 = vpop.f32.mrf.mxu0  ;;  %4613 = vst [vmem:[#allocation27_spill] sm:$0xff] %v3614_v20 }
  0xd4   :  { %2914 = vtanh.f32 %v494_v31  ;;  %v493_v39 = vmul.f32 0.5, %v465_v32  ;;  %v468_v40 = vadd.f32 %v418_v34, %v3541_v57  ;;  %v413_v41 = vadd.f32 %v412_v35, %v257_v23  ;;  %v3617_v32 = vpop.permute.xlu1 %235 }
  0xd5   :  { %2916 = vtanh.f32 %v477_v15  ;;  %v2671_v45 = vpop.f32.mrf.mxu0  ;;  %4614 = vst [vmem:[#allocation28_spill] sm:$0xff] %v3617_v32  ;;  %v261_v35 = vmul.f32 %v3570_v11, %v3553_v63 }
  0xd6   :  { %2918 = vtanh.f32 %v480_v28  ;;  %v496_v47 = vmul.f32 0.5, %v468_v40  ;;  %v467_v46 = vadd.f32 %v413_v41, %v3551_v62  ;;  %v428_v48 = vadd.f32 %v2671_v45, %v260_v36  ;;  %v3623_v45 = vpop.permute.xlu0 %124 }
  0xd7   :  { %2920 = vtanh.f32 %v493_v39  ;;  %v422_v49 = vpop.f32.mrf.mxu0  ;;  %4615 = vst [vmem:[#allocation29_spill] sm:$0xff] %v3623_v45 }
  0xd8   :  { %2922 = vtanh.f32 %v496_v47  ;;  %v495_v23 = vmul.f32 0.5, %v467_v46  ;;  %v470_v15 = vadd.f32 %v428_v48, %v3585_v37  ;;  %v423_v19 = vadd.f32 %v422_v49, %v259_v43  ;;  %v3628_v48 = vpop.permute.xlu1 %230 }
  0xd9   :  { %2924 = vtanh.f32 %v479_v44  ;;  %v2674_v31 = vpop.f32.mrf.mxu0  ;;  %v264_v43 = vmul.f32 %v3570_v11, %v3614_v20  ;;  %v2913_v46 = vpop.eup %2912  ;;  %4616 = vst [vmem:[#allocation30_spill] sm:$0xff] %v3628_v48 }
  0xda   :  { %2926 = vtanh.f32 %v495_v23  ;;  %v469_v28 = vadd.f32 %v423_v19, %v3590_v42  ;;  %v438_v34 = vadd.f32 %v2674_v31, %v262_v12  ;;  %v263_v23 = vmul.f32 %v3570_v11, %v3623_v45 }
  0xdb   :  { %2928 = vtanh.f32 %v470_v15  ;;  %v432_v36 = vpop.f32.mrf.mxu0  ;;  %v266_v15 = vmul.f32 %v3570_v11, %v3601_v27 }
  0xdc   :  { %v472_v39 = vadd.f32 %v438_v34, %v3565_v8  ;;  %2930 = vtanh.f32 %v469_v28  ;;  %v433_v40 = vadd.f32 %v432_v36, %v261_v35  ;;  %v265_v36 = vmul.f32 %v3570_v11, %v3606_v38  ;;  %v3640_v63 = vpop.permute.xlu1 %220 }
  0xdd   :  { %v2677_v41 = vpop.f32.mrf.mxu0 }
  0xde   :  { %2932 = vtanh.f32 %v472_v39  ;;  %v471_v44 = vadd.f32 %v433_v40, %v3578_v24  ;;  %v448_v12 = vadd.f32 %v2677_v41, %v264_v43  ;;  %v3636_v24 = vpop.permute.xlu0 %225 }
  0xdf   :  { %v442_v47 = vpop.f32.mrf.mxu0  ;;  %4617 = vst [vmem:[#allocation31_spill] sm:$0xff] %v3636_v24 }
  0xe0   :  { %2934 = vtanh.f32 %v471_v44  ;;  %v443_v34 = vadd.f32 %v442_v47, %v263_v23  ;;  %v486_v44 = vmul.f32 0.5, %v2913_v46  ;;  %v474_v45 = vadd.f32 %v448_v12, %v3636_v24 }
  0xe1   :  { %v2915_v49 = vpop.eup %2914  ;;  %v2680_v19 = vpop.f32.mrf.mxu0 }
  0xe2   :  { %v2917_v31 = vpop.eup %2916  ;;  %v458_v35 = vadd.f32 %v2680_v19, %v266_v15  ;;  %v502_v41 = vmul.f32 0.5, %v2915_v49  ;;  %v473_v38 = vadd.f32 %v443_v34, %v3640_v63  ;;  %v490_v37 = vadd.f32 0.5, %v486_v44 }
  0xe3   :  { %v2919_v28 = vpop.eup %2918  ;;  %v452_v39 = vpop.f32.mrf.mxu0  ;;  %v485_v47 = vmul.f32 0.5, %v2917_v31 }
  0xe4   :  { %v2921_v40 = vpop.eup %2920  ;;  %v476_v20 = vadd.f32 %v458_v35, %v3617_v32  ;;  %v453_v27 = vadd.f32 %v452_v39, %v265_v36  ;;  %v488_v23 = vmul.f32 0.5, %v2919_v28  ;;  %v506_v60 = vadd.f32 0.5, %v502_v41 }
  0xe5   :  { %v2923_v43 = vpop.eup %2922  ;;  %v501_v11 = vmul.f32 0.5, %v2921_v40  ;;  %v514_v36 = vmul.f32 0.5, %v474_v45  ;;  %v489_v31 = vadd.f32 0.5, %v485_v47  ;;  %v513_v34 = vmul.f32 0.5, %v473_v38 }
  0xe6   :  { %v2925_v8 = vpop.eup %2924  ;;  %v504_v15 = vmul.f32 0.5, %v2923_v43  ;;  %v516_v42 = vmul.f32 0.5, %v476_v20  ;;  %v475_v46 = vadd.f32 %v453_v27, %v3628_v48  ;;  %v492_v28 = vadd.f32 0.5, %v488_v23 }
  0xe7   :  { %v2927_v19 = vpop.eup %2926  ;;  %v487_v35 = vmul.f32 0.5, %v2925_v8  ;;  %v505_v40 = vadd.f32 0.5, %v501_v11  ;;  %v530_v20 = vmul.f32 0.0, %v506_v60 }
  0xe8   :  { %v2929_v49 = vpop.eup %2928  ;;  %v508_v12 = vadd.f32 0.5, %v504_v15  ;;  %v503_v24 = vmul.f32 0.5, %v2927_v19  ;;  %2936 = vtanh.f32 %v516_v42  ;;  %v515_v39 = vmul.f32 0.5, %v475_v46 }
  0xe9   :  { %v2931_v32 = vpop.eup %2930  ;;  %v534_v43 = vmul.f32 %v2929_v49, %v490_v37  ;;  %v491_v44 = vadd.f32 0.5, %v487_v35  ;;  %v529_v45 = vmul.f32 0.0, %v505_v40 }
  0xea   :  { %v507_v16 = vadd.f32 0.5, %v503_v24  ;;  %2938 = vtanh.f32 %v515_v39  ;;  %v532_v27 = vmul.f32 0.0, %v508_v12  ;;  %v533_v41 = vmul.f32 %v2931_v32, %v489_v31 }
  0xeb   :  { %v2933_v62 = vpop.eup %2932  ;;  %2940 = vtanh.f32 %v514_v36  ;;  %v3644_v8 = vadd.f32 %v534_v43, %v530_v20 }
  0xec   :  { %v536_v48 = vmul.f32 %v2933_v62, %v492_v28  ;;  %v531_v47 = vmul.f32 0.0, %v507_v16  ;;  %2942 = vtanh.f32 %v513_v34  ;;  %v3649_v24 = vadd.f32 %v533_v41, %v529_v45 }
  0xed   :  { %v2935_v15 = vpop.eup %2934 }
  0xee   :  { %v3646_v42 = vadd.f32 %v536_v48, %v532_v27  ;;  %v535_v23 = vmul.f32 %v2935_v15, %v491_v44  ;;  %v3691_v27 = vld [vmem:[%s4505_s0 + $0x1] ss:$0 sm:$0xff] }
  0xef   :  { %v555_v44 = vmul.f32 %v3691_v27, %v3535_v54  ;;  %v554_v45 = vmul.f32 %v3691_v27, %v3543_v58 }
  0xf0   :  { %2944 = vtanh.f32 %v3646_v42  ;;  %v3651_v37 = vadd.f32 %v535_v23, %v531_v47 }
  0xf1   :  { %2946 = vtanh.f32 %v3644_v8 }
  0xf2   :  { %2948 = vtanh.f32 %v3651_v37 }
  0xf3   :  { %2950 = vtanh.f32 %v3649_v24 }
  0xf5   :  { %v2937_v60 = vpop.eup %2936 }
  0xf6   :  { %v524_v38 = vmul.f32 0.5, %v2937_v60  ;;  %v557_v60 = vmul.f32 %v3691_v27, %v3527_v50 }
  0xf7   :  { %v2939_v62 = vpop.eup %2938 }
  0xf8   :  { %v2941_v32 = vpop.eup %2940  ;;  %v523_v48 = vmul.f32 0.5, %v2939_v62  ;;  %v528_v19 = vadd.f32 0.5, %v524_v38 }
  0xf9   :  { %v2943_v16 = vpop.eup %2942  ;;  %v522_v46 = vmul.f32 0.5, %v2941_v32 }
  0xfa   :  { %v527_v35 = vadd.f32 0.5, %v523_v48  ;;  %v521_v36 = vmul.f32 0.5, %v2943_v16  ;;  %v556_v48 = vmul.f32 %v3691_v27, %v3529_v51 }
  0xfb   :  { %v526_v28 = vadd.f32 0.5, %v522_v46  ;;  %v559_v46 = vmul.f32 %v3691_v27, %v3537_v55 }
  0xfc   :  { %v525_v34 = vadd.f32 0.5, %v521_v36 }
  0xfd   :  { %v2945_v11 = vpop.eup %2944 }
  0xfe   :  { %v548_v49 = vmul.f32 %v2945_v11, %v528_v19  ;;  %v2947_v12 = vpop.eup %2946 }
  0xff   :  { %v2949_v39 = vpop.eup %2948  ;;  %v546_v40 = vmul.f32 %v2947_v12, %v526_v28 }
 0x100   :  { %2681 = vmatprep.subr.mxu1 %v548_v49  ;;  %v547_v31 = vmul.f32 %v2949_v39, %v527_v35  ;;  %v2951_v43 = vpop.eup %2950  ;;  %v558_v39 = vmul.f32 %v3691_v27, %v3545_v59 }
 0x101   :  { %2682 = vmatpush3.msra.mxu1 %v548_v49  ;;  %v545_v20 = vmul.f32 %v2951_v43, %v525_v34 }
 0x102   :  { %2683 = vmatprep.subr.mxu1 %v547_v31 }
 0x103   :  { %2684 = vmatpush3.msra.mxu1 %v547_v31 }
 0x104   :  { %2685 = vmatprep.subr.mxu1 %v546_v40 }
 0x105   :  { %2686 = vmatpush3.msra.mxu1 %v546_v40 }
 0x106   :  { %2687 = vmatprep.subr.mxu1 %v545_v20 }
 0x107   :  { %2688 = vmatpush3.msra.mxu1 %v545_v20  ;;  %v561_v20 = vmul.f32 %v3691_v27, %v3531_v52 }
 0x108   :  { %2690 = vmatmul.mubr.msk.f32.vlgmr.msra.gmra.mxu1 %vm267_vm0, %v3329_v5 }
 0x109   :  { %2692 = vmatprep.mubr.msk.f32.mxu1 %vm267_vm0, %v3334_v6 }
 0x10c   :  { %2693 = vmatmul.mubr.msk.f32.gmra.mxu1 %vm267_vm0, %v3353_v9 }
 0x10d   :  { %2695 = vmatprep.mubr.msk.f32.mxu1 %vm267_vm0, %v3358_v10 }
 0x110   :  { %2696 = vmatmul.mubr.msk.f32.gmra.mxu1 %vm267_vm0, %v3373_v13 }
 0x111   :  { %2698 = vmatprep.mubr.msk.f32.mxu1 %vm267_vm0, %v3378_v14 }
 0x114   :  { %2699 = vmatmul.mubr.msk.f32.gmra.mxu1 %vm267_vm0, %v3393_v17 }
 0x115   :  { %2701 = vmatprep.mubr.msk.f32.mxu1 %vm267_vm0, %v3398_v18 }
 0x118   :  { %2702 = vmatmul.mubr.msk.f32.gmra.mxu1 %vm267_vm0, %v3413_v21 }
 0x119   :  { %2704 = vmatprep.mubr.msk.f32.mxu1 %vm267_vm0, %v3418_v22 }
 0x11c   :  { %2705 = vmatmul.mubr.msk.f32.gmra.mxu1 %vm267_vm0, %v3433_v25 }
 0x11d   :  { %2707 = vmatprep.mubr.msk.f32.mxu1 %vm267_vm0, %v3438_v26 }
 0x120   :  { %2708 = vmatmul.mubr.msk.f32.gmra.mxu1 %vm267_vm0, %v3453_v29 }
 0x121   :  { %2710 = vmatprep.mubr.msk.f32.mxu1 %vm267_vm0, %v3458_v30 }
 0x124   :  { %2711 = vmatmul.mubr.msk.f32.gmra.mxu1 %vm267_vm0, %v3473_v33 }
 0x125   :  { %2753 = vmatprep.mubr.msk.f32.mxu1 %vm267_vm0, %v3324_v4 }
 0x1c8   :  { %v2691_v41 = vpop.f32.mrf.mxu1 }
 0x1c9   :  { %v642_v15 = vadd.f32 %v2691_v41, %v555_v44 }
 0x1ca   :  { %v636_v47 = vpop.f32.mrf.mxu1 }
 0x1cb   :  { %v637_v23 = vadd.f32 %v636_v47, %v554_v45  ;;  %v716_v38 = vadd.f32 %v642_v15, %v3555_v0  ;;  %v560_v15 = vmul.f32 %v3691_v27, %v3533_v53 }
 0x1cc   :  { %v2694_v62 = vpop.f32.mrf.mxu1 }
 0x1cd   :  { %v652_v32 = vadd.f32 %v2694_v62, %v557_v60  ;;  %v715_v16 = vadd.f32 %v637_v23, %v3561_v3  ;;  %v732_v35 = vmul.f32 0.5, %v716_v38  ;;  %v563_v38 = vmul.f32 %v3691_v27, %v3559_v2 }
 0x1ce   :  { %v646_v19 = vpop.f32.mrf.mxu1 }
 0x1cf   :  { %v647_v11 = vadd.f32 %v646_v19, %v556_v48  ;;  %v718_v49 = vadd.f32 %v652_v32, %v3539_v56  ;;  %v731_v31 = vmul.f32 0.5, %v715_v16  ;;  %2952 = vtanh.f32 %v732_v35 }
 0x1d0   :  { %v2697_v12 = vpop.f32.mrf.mxu1 }
 0x1d1   :  { %v662_v36 = vadd.f32 %v2697_v12, %v559_v46  ;;  %v717_v28 = vadd.f32 %v647_v11, %v3549_v61  ;;  %v734_v44 = vmul.f32 0.5, %v718_v49  ;;  %2954 = vtanh.f32 %v731_v31  ;;  %v4618_v11 = vld [vmem:[#allocation21_spill] sm:$0xff]  ;;  %v4619_v12 = vld [vmem:[#allocation16_spill] sm:$0xff]  ;;  %v4620_v31 = vld [vmem:[#allocation15_spill] sm:$0xff] }
 0x1d2   :  { %v656_v43 = vpop.f32.mrf.mxu1  ;;  %v562_v46 = vmul.f32 %v3691_v27, %v4618_v11  ;;  %v4631_v11 = vld [vmem:[#allocation28_spill] sm:$0xff] }
 0x1d3   :  { %v720_v40 = vadd.f32 %v662_v36, %v3557_v1  ;;  %v657_v34 = vadd.f32 %v656_v43, %v558_v39  ;;  %v733_v60 = vmul.f32 0.5, %v717_v28  ;;  %v565_v28 = vmul.f32 %v3691_v27, %v4620_v31 }
 0x1d4   :  { %v2700_v41 = vpop.f32.mrf.mxu1 }
 0x1d5   :  { %v748_v45 = vmul.f32 0.5, %v720_v40  ;;  %v719_v47 = vadd.f32 %v657_v34, %v3563_v7  ;;  %v672_v23 = vadd.f32 %v2700_v41, %v561_v20  ;;  %v4621_v40 = vld [vmem:[#allocation23_spill] sm:$0xff]  ;;  %v4622_v41 = vld [vmem:[#allocation24_spill] sm:$0xff] }
 0x1d6   :  { %v666_v62 = vpop.f32.mrf.mxu1 }
 0x1d7   :  { %2956 = vtanh.f32 %v748_v45  ;;  %v747_v32 = vmul.f32 0.5, %v719_v47  ;;  %v722_v48 = vadd.f32 %v672_v23, %v3541_v57  ;;  %v667_v16 = vadd.f32 %v666_v62, %v560_v15  ;;  %v4623_v47 = vld [vmem:[#allocation17_spill] sm:$0xff] }
 0x1d8   :  { %2958 = vtanh.f32 %v734_v44  ;;  %v2703_v19 = vpop.f32.mrf.mxu1  ;;  %v564_v23 = vmul.f32 %v3691_v27, %v4623_v47 }
 0x1d9   :  { %2960 = vtanh.f32 %v747_v32  ;;  %v750_v49 = vmul.f32 0.5, %v722_v48  ;;  %v721_v35 = vadd.f32 %v667_v16, %v4619_v12  ;;  %v682_v36 = vadd.f32 %v2703_v19, %v563_v38  ;;  %v4625_v16 = vld [vmem:[#allocation27_spill] sm:$0xff] }
 0x1da   :  { %2962 = vtanh.f32 %v733_v60  ;;  %v676_v39 = vpop.f32.mrf.mxu1  ;;  %v4624_v60 = vld [vmem:[#allocation20_spill] sm:$0xff]  ;;  %v567_v19 = vmul.f32 %v3691_v27, %v4625_v16 }
 0x1db   :  { %2964 = vtanh.f32 %v750_v49  ;;  %v749_v43 = vmul.f32 0.5, %v721_v35  ;;  %v724_v34 = vadd.f32 %v682_v36, %v4621_v40  ;;  %v677_v20 = vadd.f32 %v676_v39, %v562_v46  ;;  %v4626_v49 = vld [vmem:[#allocation22_spill] sm:$0xff]  ;;  %v4630_v40 = vld [vmem:[#allocation31_spill] sm:$0xff] }
 0x1dc   :  { %v2706_v44 = vpop.f32.mrf.mxu1  ;;  %v2953_v46 = vpop.eup %2952 }
 0x1dd   :  { %2966 = vtanh.f32 %v749_v43  ;;  %v723_v15 = vadd.f32 %v677_v20, %v4622_v41  ;;  %v692_v45 = vadd.f32 %v2706_v44, %v565_v28  ;;  %v4628_v44 = vld [vmem:[#allocation25_spill] sm:$0xff] }
 0x1de   :  { %2968 = vtanh.f32 %v724_v34  ;;  %v686_v62 = vpop.f32.mrf.mxu1  ;;  %v2955_v39 = vpop.eup %2954  ;;  %v4627_v34 = vld [vmem:[#allocation29_spill] sm:$0xff] }
 0x1df   :  { %2970 = vtanh.f32 %v723_v15  ;;  %v726_v38 = vadd.f32 %v692_v45, %v4624_v60  ;;  %v687_v32 = vadd.f32 %v686_v62, %v564_v23  ;;  %v566_v20 = vmul.f32 %v3691_v27, %v4627_v34 }
 0x1e0   :  { %v2709_v48 = vpop.f32.mrf.mxu1  ;;  %v569_v15 = vmul.f32 %v3691_v27, %v4628_v44  ;;  %v740_v62 = vmul.f32 0.5, %v2953_v46  ;;  %v739_v16 = vmul.f32 0.5, %v2955_v39 }
 0x1e1   :  { %2972 = vtanh.f32 %v726_v38  ;;  %v725_v35 = vadd.f32 %v687_v32, %v4626_v49  ;;  %v702_v28 = vadd.f32 %v2709_v48, %v567_v19  ;;  %v4629_v32 = vld [vmem:[#allocation26_spill] sm:$0xff] }
 0x1e2   :  { %v696_v36 = vpop.f32.mrf.mxu1  ;;  %v568_v49 = vmul.f32 %v3691_v27, %v4629_v32  ;;  %v744_v2 = vadd.f32 0.5, %v740_v62  ;;  %v4632_v27 = vld [vmem:[#allocation30_spill] sm:$0xff] }
 0x1e3   :  { %2974 = vtanh.f32 %v725_v35  ;;  %v697_v47 = vadd.f32 %v696_v36, %v566_v20  ;;  %v728_v31 = vadd.f32 %v702_v28, %v4630_v40  ;;  %v743_v36 = vadd.f32 0.5, %v739_v16 }
 0x1e4   :  { %v2957_v43 = vpop.eup %2956  ;;  %v2712_v45 = vpop.f32.mrf.mxu1 }
 0x1e5   :  { %v2959_v23 = vpop.eup %2958  ;;  %v756_v38 = vmul.f32 0.5, %v2957_v43  ;;  %v712_v41 = vadd.f32 %v2712_v45, %v569_v15  ;;  %v727_v20 = vadd.f32 %v697_v47, %v3640_v63  ;;  %v768_v40 = vmul.f32 0.5, %v728_v31 }
 0x1e6   :  { %v2961_v60 = vpop.eup %2960  ;;  %v706_v48 = vpop.f32.mrf.mxu1  ;;  %v742_v46 = vmul.f32 0.5, %v2959_v23 }
 0x1e7   :  { %v2963_v19 = vpop.eup %2962  ;;  %v755_v35 = vmul.f32 0.5, %v2961_v60  ;;  %v760_v12 = vadd.f32 0.5, %v756_v38  ;;  %v730_v44 = vadd.f32 %v712_v41, %v4631_v11  ;;  %v707_v57 = vadd.f32 %v706_v48, %v568_v49 }
 0x1e8   :  { %v2965_v34 = vpop.eup %2964  ;;  %v741_v60 = vmul.f32 0.5, %v2963_v19  ;;  %v746_v62 = vadd.f32 0.5, %v742_v46 }
 0x1e9   :  { %v759_v43 = vadd.f32 0.5, %v755_v35  ;;  %v758_v7 = vmul.f32 0.5, %v2965_v34  ;;  %v770_v15 = vmul.f32 0.5, %v730_v44  ;;  %v729_v45 = vadd.f32 %v707_v57, %v4632_v27 }
 0x1ea   :  { %v2967_v39 = vpop.eup %2966  ;;  %v784_v41 = vmul.f32 %v760_v12, %v3644_v8  ;;  %v767_v57 = vmul.f32 0.5, %v727_v20  ;;  %v745_v35 = vadd.f32 0.5, %v741_v60 }
 0x1eb   :  { %v2969_v32 = vpop.eup %2968  ;;  %v762_v53 = vadd.f32 0.5, %v758_v7  ;;  %v757_v28 = vmul.f32 0.5, %v2967_v39  ;;  %2976 = vtanh.f32 %v770_v15  ;;  %v769_v23 = vmul.f32 0.5, %v729_v45 }
 0x1ec   :  { %v2971_v38 = vpop.eup %2970  ;;  %v788_v49 = vmul.f32 %v2969_v32, %v744_v2  ;;  %v783_v34 = vmul.f32 %v759_v43, %v3649_v24 }
 0x1ed   :  { %v787_v16 = vmul.f32 %v2971_v38, %v743_v36  ;;  %v761_v47 = vadd.f32 0.5, %v757_v28  ;;  %2978 = vtanh.f32 %v769_v23  ;;  %v786_v7 = vmul.f32 %v762_v53, %v3646_v42 }
 0x1ee   :  { %v2973_v48 = vpop.eup %2972  ;;  %v3743_v44 = vadd.f32 %v788_v49, %v784_v41  ;;  %2980 = vtanh.f32 %v768_v40 }
 0x1ef   :  { %v3746_v19 = vadd.f32 %v787_v16, %v783_v34  ;;  %v790_v31 = vmul.f32 %v2973_v48, %v746_v62  ;;  %v785_v12 = vmul.f32 %v761_v47, %v3651_v37  ;;  %2982 = vtanh.f32 %v767_v57 }
 0x1f0   :  { %v2975_v2 = vpop.eup %2974 }
 0x1f1   :  { %v3748_v8 = vadd.f32 %v790_v31, %v786_v7  ;;  %v789_v24 = vmul.f32 %v2975_v2, %v745_v35 }
 0x1f3   :  { %2984 = vtanh.f32 %v3748_v8  ;;  %v3752_v32 = vadd.f32 %v789_v24, %v785_v12 }
 0x1f4   :  { %2986 = vtanh.f32 %v3743_v44 }
 0x1f5   :  { %2988 = vtanh.f32 %v3752_v32 }
 0x1f6   :  { %2990 = vtanh.f32 %v3746_v19 }
 0x1f8   :  { %v2977_v53 = vpop.eup %2976 }
 0x1f9   :  { %v778_v40 = vmul.f32 0.5, %v2977_v53 }
 0x1fa   :  { %v2979_v42 = vpop.eup %2978 }
 0x1fb   :  { %v2981_v46 = vpop.eup %2980  ;;  %v777_v43 = vmul.f32 0.5, %v2979_v42  ;;  %v782_v36 = vadd.f32 0.5, %v778_v40 }
 0x1fc   :  { %v2983_v39 = vpop.eup %2982  ;;  %v776_v20 = vmul.f32 0.5, %v2981_v46 }
 0x1fd   :  { %v781_v60 = vadd.f32 0.5, %v777_v43  ;;  %v775_v28 = vmul.f32 0.5, %v2983_v39  ;;  %v4633_v43 = vld [vmem:[#allocation10_spill] sm:$0xff] }
 0x1fe   :  { %v780_v49 = vadd.f32 0.5, %v776_v20 }
 0x1ff   :  { %v779_v34 = vadd.f32 0.5, %v775_v28  ;;  %v4635_v28 = vld [vmem:[#allocation18_spill] sm:$0xff] }
 0x200   :  { %v2985_v37 = vpop.eup %2984 }
 0x201   :  { %v802_v15 = vmul.f32 %v2985_v37, %v782_v36  ;;  %v2987_v45 = vpop.eup %2986  ;;  %v4634_v37 = vld [vmem:[#allocation19_spill] sm:$0xff] }
 0x202   :  { %v2989_v38 = vpop.eup %2988  ;;  %v800_v62 = vmul.f32 %v2987_v45, %v780_v49  ;;  %v4636_v49 = vld [vmem:[#allocation13_spill] sm:$0xff] }
 0x203   :  { %2713 = vmatprep.subr.mxu0 %v802_v15  ;;  %v801_v41 = vmul.f32 %v2989_v38, %v781_v60  ;;  %v2991_v23 = vpop.eup %2990 }
 0x204   :  { %2714 = vmatpush3.msra.mxu0 %v802_v15  ;;  %v799_v16 = vmul.f32 %v2991_v23, %v779_v34 }
 0x205   :  { %2715 = vmatprep.subr.mxu0 %v801_v41 }
 0x206   :  { %2716 = vmatpush3.msra.mxu0 %v801_v41 }
 0x207   :  { %2717 = vmatprep.subr.mxu0 %v800_v62 }
 0x208   :  { %2718 = vmatpush3.msra.mxu0 %v800_v62 }
 0x209   :  { %2719 = vmatprep.subr.mxu0 %v799_v16 }
 0x20a   :  { %2720 = vmatpush3.msra.mxu0 %v799_v16  ;;  %v4637_v16 = vld [vmem:[#allocation21_spill] sm:$0xff] }
 0x20b   :  { %2722 = vmatmul.mubr.msk.f32.vlgmr.msra.gmra.mxu0 %vm267_vm0, %v3329_v5  ;;  %v3792_v5 = vld [vmem:[%s4505_s0 + $0x2] ss:$0 sm:$0xff] }
 0x20c   :  { %2724 = vmatprep.mubr.msk.f32.mxu0 %vm267_vm0, %v3334_v6  ;;  %v809_v6 = vmul.f32 %v3792_v5, %v3535_v54  ;;  %v812_v31 = vmul.f32 %v3792_v5, %v3545_v59  ;;  %v815_v42 = vmul.f32 %v3792_v5, %v3531_v52  ;;  %v814_v39 = vmul.f32 %v3792_v5, %v4633_v43 }
 0x20d   :  { %v817_v38 = vmul.f32 %v3792_v5, %v4635_v28 }
 0x20f   :  { %2725 = vmatmul.mubr.msk.f32.gmra.mxu0 %vm267_vm0, %v3353_v9 }
 0x210   :  { %2727 = vmatprep.mubr.msk.f32.mxu0 %vm267_vm0, %v3358_v10 }
 0x213   :  { %2728 = vmatmul.mubr.msk.f32.gmra.mxu0 %vm267_vm0, %v3373_v13  ;;  %v808_v13 = vmul.f32 %v3792_v5, %v3543_v58 }
 0x214   :  { %2730 = vmatprep.mubr.msk.f32.mxu0 %vm267_vm0, %v3378_v14 }
 0x217   :  { %2731 = vmatmul.mubr.msk.f32.gmra.mxu0 %vm267_vm0, %v3393_v17 }
 0x218   :  { %2733 = vmatprep.mubr.msk.f32.mxu0 %vm267_vm0, %v3398_v18  ;;  %v811_v18 = vmul.f32 %v3792_v5, %v3527_v50 }
 0x21b   :  { %2734 = vmatmul.mubr.msk.f32.gmra.mxu0 %vm267_vm0, %v3413_v21 }
 0x21c   :  { %2736 = vmatprep.mubr.msk.f32.mxu0 %vm267_vm0, %v3418_v22 }
 0x21f   :  { %2737 = vmatmul.mubr.msk.f32.gmra.mxu0 %vm267_vm0, %v3433_v25  ;;  %v810_v25 = vmul.f32 %v3792_v5, %v3529_v51 }
 0x220   :  { %2739 = vmatprep.mubr.msk.f32.mxu0 %vm267_vm0, %v3438_v26 }
 0x223   :  { %2740 = vmatmul.mubr.msk.f32.gmra.mxu0 %vm267_vm0, %v3453_v29 }
 0x224   :  { %2742 = vmatprep.mubr.msk.f32.mxu0 %vm267_vm0, %v3458_v30 }
 0x227   :  { %2743 = vmatmul.mubr.msk.f32.gmra.mxu0 %vm267_vm0, %v3473_v33  ;;  %v813_v33 = vmul.f32 %v3792_v5, %v3537_v55 }
 0x228   :  { %2785 = vmatprep.mubr.msk.f32.mxu0 %vm267_vm0, %v3324_v4 }
 0x2cb   :  { %v2723_v9 = vpop.f32.mrf.mxu0 }
 0x2cc   :  { %v896_v10 = vadd.f32 %v2723_v9, %v809_v6  ;;  %v816_v6 = vmul.f32 %v3792_v5, %v4637_v16 }
 0x2cd   :  { %v890_v14 = vpop.f32.mrf.mxu0 }
 0x2ce   :  { %v891_v17 = vadd.f32 %v890_v14, %v808_v13  ;;  %v970_v4 = vadd.f32 %v896_v10, %v3555_v0  ;;  %v4638_v10 = vld [vmem:[#allocation16_spill] sm:$0xff] }
 0x2cf   :  { %v2726_v21 = vpop.f32.mrf.mxu0 }
 0x2d0   :  { %v906_v22 = vadd.f32 %v2726_v21, %v811_v18  ;;  %v969_v26 = vadd.f32 %v891_v17, %v3561_v3  ;;  %v986_v57 = vmul.f32 0.5, %v970_v4  ;;  %v4639_v18 = vld [vmem:[#allocation15_spill] sm:$0xff] }
 0x2d1   :  { %v900_v29 = vpop.f32.mrf.mxu0  ;;  %v819_v21 = vmul.f32 %v3792_v5, %v4639_v18 }
 0x2d2   :  { %v901_v30 = vadd.f32 %v900_v29, %v810_v25  ;;  %v972_v48 = vadd.f32 %v906_v22, %v3539_v56  ;;  %v985_v35 = vmul.f32 0.5, %v969_v26  ;;  %2992 = vtanh.f32 %v986_v57  ;;  %v4640_v22 = vld [vmem:[#allocation23_spill] sm:$0xff] }
 0x2d3   :  { %v2729_v47 = vpop.f32.mrf.mxu0 }
 0x2d4   :  { %v916_v7 = vadd.f32 %v2729_v47, %v813_v33  ;;  %v971_v2 = vadd.f32 %v901_v30, %v3549_v61  ;;  %v988_v40 = vmul.f32 0.5, %v972_v48  ;;  %2994 = vtanh.f32 %v985_v35  ;;  %v4641_v30 = vld [vmem:[#allocation24_spill] sm:$0xff]  ;;  %v4642_v47 = vld [vmem:[#allocation17_spill] sm:$0xff] }
 0x2d5   :  { %v910_v12 = vpop.f32.mrf.mxu0  ;;  %v818_v57 = vmul.f32 %v3792_v5, %v4642_v47 }
 0x2d6   :  { %v974_v24 = vadd.f32 %v916_v7, %v3557_v1  ;;  %v911_v53 = vadd.f32 %v910_v12, %v812_v31  ;;  %v987_v45 = vmul.f32 0.5, %v971_v2  ;;  %v4643_v31 = vld [vmem:[#allocation20_spill] sm:$0xff] }
 0x2d7   :  { %v2732_v46 = vpop.f32.mrf.mxu0 }
 0x2d8   :  { %v1002_v36 = vmul.f32 0.5, %v974_v24  ;;  %v973_v20 = vadd.f32 %v911_v53, %v4634_v37  ;;  %v926_v15 = vadd.f32 %v2732_v46, %v815_v42  ;;  %v4644_v24 = vld [vmem:[#allocation27_spill] sm:$0xff] }
 0x2d9   :  { %v920_v60 = vpop.f32.mrf.mxu0  ;;  %v821_v53 = vmul.f32 %v3792_v5, %v4644_v24 }
 0x2da   :  { %2996 = vtanh.f32 %v1002_v36  ;;  %v1001_v41 = vmul.f32 0.5, %v973_v20  ;;  %v976_v23 = vadd.f32 %v926_v15, %v4636_v49  ;;  %v921_v62 = vadd.f32 %v920_v60, %v814_v39 }
 0x2db   :  { %2998 = vtanh.f32 %v988_v40  ;;  %v2735_v34 = vpop.f32.mrf.mxu0  ;;  %v4645_v40 = vld [vmem:[#allocation22_spill] sm:$0xff] }
 0x2dc   :  { %3000 = vtanh.f32 %v1001_v41  ;;  %v1004_v9 = vmul.f32 0.5, %v976_v23  ;;  %v975_v13 = vadd.f32 %v921_v62, %v4638_v10  ;;  %v936_v14 = vadd.f32 %v2735_v34, %v817_v38  ;;  %v4647_v38 = vld [vmem:[#allocation25_spill] sm:$0xff] }
 0x2dd   :  { %3002 = vtanh.f32 %v987_v45  ;;  %v930_v17 = vpop.f32.mrf.mxu0  ;;  %v4646_v45 = vld [vmem:[#allocation29_spill] sm:$0xff]  ;;  %v823_v41 = vmul.f32 %v3792_v5, %v4647_v38 }
 0x2de   :  { %3004 = vtanh.f32 %v1004_v9  ;;  %v1003_v4 = vmul.f32 0.5, %v975_v13  ;;  %v978_v25 = vadd.f32 %v936_v14, %v4640_v22  ;;  %v931_v26 = vadd.f32 %v930_v17, %v816_v6 }
 0x2df   :  { %v2738_v29 = vpop.f32.mrf.mxu0  ;;  %v2993_v42 = vpop.eup %2992  ;;  %v820_v60 = vmul.f32 %v3792_v5, %v4646_v45 }
 0x2e0   :  { %3006 = vtanh.f32 %v1003_v4  ;;  %v977_v33 = vadd.f32 %v931_v26, %v4641_v30  ;;  %v946_v48 = vadd.f32 %v2738_v29, %v819_v21  ;;  %v994_v34 = vmul.f32 0.5, %v2993_v42  ;;  %v4648_v21 = vld [vmem:[#allocation26_spill] sm:$0xff] }
 0x2e1   :  { %3008 = vtanh.f32 %v978_v25  ;;  %v940_v7 = vpop.f32.mrf.mxu0  ;;  %v2995_v36 = vpop.eup %2994  ;;  %v822_v4 = vmul.f32 %v3792_v5, %v4648_v21 }
 0x2e2   :  { %3010 = vtanh.f32 %v977_v33  ;;  %v980_v35 = vadd.f32 %v946_v48, %v4643_v31  ;;  %v941_v2 = vadd.f32 %v940_v7, %v818_v57  ;;  %v993_v13 = vmul.f32 0.5, %v2995_v36  ;;  %v4649_v33 = vld [vmem:[#allocation31_spill] sm:$0xff] }
 0x2e3   :  { %v2741_v12 = vpop.f32.mrf.mxu0 }
 0x2e4   :  { %3012 = vtanh.f32 %v980_v35  ;;  %v979_v46 = vadd.f32 %v941_v2, %v4645_v40  ;;  %v956_v20 = vadd.f32 %v2741_v12, %v821_v53  ;;  %v998_v12 = vadd.f32 0.5, %v994_v34 }
 0x2e5   :  { %v950_v39 = vpop.f32.mrf.mxu0 }
 0x2e6   :  { %3014 = vtanh.f32 %v979_v46  ;;  %v951_v14 = vadd.f32 %v950_v39, %v820_v60  ;;  %v982_v48 = vadd.f32 %v956_v20, %v4649_v33  ;;  %v997_v39 = vadd.f32 0.5, %v993_v13 }
 0x2e7   :  { %v2997_v15 = vpop.eup %2996  ;;  %v2744_v23 = vpop.f32.mrf.mxu0 }
 0x2e8   :  { %v2999_v62 = vpop.eup %2998  ;;  %v1010_v6 = vmul.f32 0.5, %v2997_v15  ;;  %v966_v17 = vadd.f32 %v2744_v23, %v823_v41  ;;  %v981_v15 = vadd.f32 %v951_v14, %v3640_v63  ;;  %v1022_v33 = vmul.f32 0.5, %v982_v48 }
 0x2e9   :  { %v3001_v9 = vpop.eup %3000  ;;  %v960_v25 = vpop.f32.mrf.mxu0  ;;  %v996_v53 = vmul.f32 0.5, %v2999_v62 }
 0x2ea   :  { %v3003_v26 = vpop.eup %3002  ;;  %v1009_v29 = vmul.f32 0.5, %v3001_v9  ;;  %v1014_v7 = vadd.f32 0.5, %v1010_v6  ;;  %v984_v35 = vadd.f32 %v966_v17, %v4631_v11  ;;  %v961_v2 = vadd.f32 %v960_v25, %v822_v4 }
 0x2eb   :  { %v3005_v57 = vpop.eup %3004  ;;  %v995_v23 = vmul.f32 0.5, %v3003_v26  ;;  %v1000_v34 = vadd.f32 0.5, %v996_v53 }
 0x2ec   :  { %v1013_v42 = vadd.f32 0.5, %v1009_v29  ;;  %v1012_v46 = vmul.f32 0.5, %v3005_v57  ;;  %v1024_v60 = vmul.f32 0.5, %v984_v35  ;;  %v983_v5 = vadd.f32 %v961_v2, %v4632_v27 }
 0x2ed   :  { %v3007_v36 = vpop.eup %3006  ;;  %v1038_v17 = vmul.f32 %v1014_v7, %v3743_v44  ;;  %v1021_v35 = vmul.f32 0.5, %v981_v15 }
 0x2ee   :  { %v3009_v41 = vpop.eup %3008  ;;  %v1016_v9 = vadd.f32 0.5, %v1012_v46  ;;  %v1011_v20 = vmul.f32 0.5, %v3007_v36  ;;  %3016 = vtanh.f32 %v1024_v60  ;;  %v1023_v62 = vmul.f32 0.5, %v983_v5 }
 0x2ef   :  { %v3011_v6 = vpop.eup %3010  ;;  %v1042_v4 = vmul.f32 %v3009_v41, %v998_v12  ;;  %v1037_v25 = vmul.f32 %v1013_v42, %v3746_v19  ;;  %v999_v46 = vadd.f32 0.5, %v995_v23 }
 0x2f0   :  { %v1041_v13 = vmul.f32 %v3011_v6, %v997_v39  ;;  %v1015_v14 = vadd.f32 0.5, %v1011_v20  ;;  %3018 = vtanh.f32 %v1023_v62  ;;  %v1040_v26 = vmul.f32 %v1016_v9, %v3748_v8 }
 0x2f1   :  { %v3013_v29 = vpop.eup %3012  ;;  %v3844_v57 = vadd.f32 %v1042_v4, %v1038_v17  ;;  %3020 = vtanh.f32 %v1022_v33 }
 0x2f2   :  { %v3847_v2 = vadd.f32 %v1041_v13, %v1037_v25  ;;  %v1044_v48 = vmul.f32 %v3013_v29, %v1000_v34  ;;  %v1039_v12 = vmul.f32 %v1015_v14, %v3752_v32  ;;  %3022 = vtanh.f32 %v1021_v35  ;;  %v3861_v29 = vld [vmem:[%s4506_s1 + $0x8] sm:$0xff]  ;;  %v3868_v14 = vld [vmem:[%s4506_s1 + $0x10] sm:$0xff]  ;;  %v3875_v35 = vld [vmem:[%s4506_s1 + $0x18] sm:$0xff] }
 0x2f3   :  { %v3015_v44 = vpop.eup %3014 }
 0x2f4   :  { %v3849_v7 = vadd.f32 %v1044_v48, %v1040_v26  ;;  %v1043_v19 = vmul.f32 %v3015_v44, %v999_v46  ;;  %v3882_v26 = vld [vmem:[%s4506_s1 + $0x20] sm:$0xff]  ;;  %v3889_v48 = vld [vmem:[%s4506_s1 + $0x28] sm:$0xff]  ;;  %v3896_v46 = vld [vmem:[%s4506_s1 + $0x30] sm:$0xff] }
 0x2f5   :  { %v3903_v44 = vld [vmem:[%s4506_s1 + $0x38] sm:$0xff] }
 0x2f6   :  { %3024 = vtanh.f32 %v3849_v7  ;;  %v3853_v53 = vadd.f32 %v1043_v19, %v1039_v12  ;;  %v3910_v12 = vld [vmem:[%s4506_s1 + $0x40] sm:$0xff]  ;;  %v3917_v19 = vld [vmem:[%s4506_s1 + $0x48] sm:$0xff] }
 0x2f7   :  { %3026 = vtanh.f32 %v3844_v57 }
 0x2f8   :  { %3028 = vtanh.f32 %v3853_v53 }
 0x2f9   :  { %3030 = vtanh.f32 %v3847_v2 }
 0x2fb   :  { %v3017_v8 = vpop.eup %3016 }
 0x2fc   :  { %v1032_v33 = vmul.f32 0.5, %v3017_v8  ;;  %v3924_v8 = vld [vmem:[%s4506_s1 + $0x50] sm:$0xff] }
 0x2fd   :  { %v3019_v42 = vpop.eup %3018 }
 0x2fe   :  { %v3021_v36 = vpop.eup %3020  ;;  %v1031_v39 = vmul.f32 0.5, %v3019_v42  ;;  %v1036_v60 = vadd.f32 0.5, %v1032_v33  ;;  %v3931_v42 = vld [vmem:[%s4506_s1 + $0x58] sm:$0xff]  ;;  %v3938_v33 = vld [vmem:[%s4506_s1 + $0x60] sm:$0xff] }
 0x2ff   :  { %v3023_v15 = vpop.eup %3022  ;;  %v1030_v5 = vmul.f32 0.5, %v3021_v36  ;;  %v3945_v36 = vld [vmem:[%s4506_s1 + $0x68] sm:$0xff] }
 0x300   :  { %v1035_v9 = vadd.f32 0.5, %v1031_v39  ;;  %v1029_v20 = vmul.f32 0.5, %v3023_v15  ;;  %v3952_v39 = vld [vmem:[%s4506_s1 + $0x70] sm:$0xff]  ;;  %v3959_v15 = vld [vmem:[%s4506_s1 + $0x78] sm:$0xff] }
 0x301   :  { %v1034_v4 = vadd.f32 0.5, %v1030_v5 }
 0x302   :  { %v1033_v25 = vadd.f32 0.5, %v1029_v20 }
 0x303   :  { %v3025_v32 = vpop.eup %3024 }
 0x304   :  { %v1056_v41 = vmul.f32 %v3025_v32, %v1036_v60  ;;  %v3027_v23 = vpop.eup %3026  ;;  %v3966_v60 = vld [vmem:[%s4506_s1] sm:$0xff] }
 0x305   :  { %v3029_v6 = vpop.eup %3028  ;;  %v1054_v34 = vmul.f32 %v3027_v23, %v1034_v4  ;;  %4650 = vst [vmem:[#allocation28_spill] sm:$0xff] %v3966_v60  ;;  %v3973_v32 = vld [vmem:[%s4505_s0 + $0x3] ss:$0 sm:$0xff] }
 0x306   :  { %2745 = vmatprep.subr.mxu1 %v1056_v41  ;;  %v1055_v17 = vmul.f32 %v3029_v6, %v1035_v9  ;;  %v3031_v62 = vpop.eup %3030  ;;  %v1063_v5 = vmul.f32 %v3973_v32, %v3535_v54  ;;  %v1062_v9 = vmul.f32 %v3973_v32, %v3543_v58 }
 0x307   :  { %2746 = vmatpush3.msra.mxu1 %v1056_v41  ;;  %v1053_v13 = vmul.f32 %v3031_v62, %v1033_v25  ;;  %v1064_v25 = vmul.f32 %v3973_v32, %v3529_v51 }
 0x308   :  { %2747 = vmatprep.subr.mxu1 %v1055_v17 }
 0x309   :  { %2748 = vmatpush3.msra.mxu1 %v1055_v17  ;;  %v1065_v17 = vmul.f32 %v3973_v32, %v3527_v50  ;;  %v1066_v50 = vmul.f32 %v3973_v32, %v3545_v59 }
 0x30a   :  { %2749 = vmatprep.subr.mxu1 %v1054_v34 }
 0x30b   :  { %2750 = vmatpush3.msra.mxu1 %v1054_v34 }
 0x30c   :  { %2751 = vmatprep.subr.mxu1 %v1053_v13 }
 0x30d   :  { %2752 = vmatpush3.msra.mxu1 %v1053_v13 }
 0x30e   :  { %2754 = vmatmul.mubr.msk.f32.vlgmr.msra.gmra.mxu1 %vm267_vm0, %v3861_v29 }
 0x30f   :  { %2756 = vmatprep.mubr.msk.f32.mxu1 %vm267_vm0, %v3868_v14 }
 0x312   :  { %2757 = vmatmul.mubr.msk.f32.gmra.mxu1 %vm267_vm0, %v3875_v35 }
 0x313   :  { %2759 = vmatprep.mubr.msk.f32.mxu1 %vm267_vm0, %v3882_v26 }
 0x316   :  { %2760 = vmatmul.mubr.msk.f32.gmra.mxu1 %vm267_vm0, %v3889_v48 }
 0x317   :  { %2762 = vmatprep.mubr.msk.f32.mxu1 %vm267_vm0, %v3896_v46 }
 0x31a   :  { %2763 = vmatmul.mubr.msk.f32.gmra.mxu1 %vm267_vm0, %v3903_v44 }
 0x31b   :  { %2765 = vmatprep.mubr.msk.f32.mxu1 %vm267_vm0, %v3910_v12 }
 0x31e   :  { %2766 = vmatmul.mubr.msk.f32.gmra.mxu1 %vm267_vm0, %v3917_v19 }
 0x31f   :  { %2768 = vmatprep.mubr.msk.f32.mxu1 %vm267_vm0, %v3924_v8 }
 0x322   :  { %2769 = vmatmul.mubr.msk.f32.gmra.mxu1 %vm267_vm0, %v3931_v42 }
 0x323   :  { %2771 = vmatprep.mubr.msk.f32.mxu1 %vm267_vm0, %v3938_v33 }
 0x326   :  { %2772 = vmatmul.mubr.msk.f32.gmra.mxu1 %vm267_vm0, %v3945_v36 }
 0x327   :  { %2774 = vmatprep.mubr.msk.f32.mxu1 %vm267_vm0, %v3952_v39 }
 0x32a   :  { %2775 = vmatmul.mubr.msk.f32.gmra.mxu1 %vm267_vm0, %v3959_v15 }
 0x32b   :  { %2817 = vmatprep.mubr.msk.f32.mxu1 %vm267_vm0, %v3966_v60 }
 0x3ce   :  { %v2755_v41 = vpop.f32.mrf.mxu1 }
 0x3cf   :  { %v1150_v23 = vadd.f32 %v2755_v41, %v1063_v5  ;;  %v1067_v5 = vmul.f32 %v3973_v32, %v3537_v55 }
 0x3d0   :  { %v1144_v20 = vpop.f32.mrf.mxu1 }
 0x3d1   :  { %v1145_v6 = vadd.f32 %v1144_v20, %v1062_v9  ;;  %v1224_v62 = vadd.f32 %v1150_v23, %v3555_v0 }
 0x3d2   :  { %v2758_v4 = vpop.f32.mrf.mxu1 }
 0x3d3   :  { %v1160_v34 = vadd.f32 %v2758_v4, %v1065_v17  ;;  %v1223_v13 = vadd.f32 %v1145_v6, %v3561_v3  ;;  %v1240_v20 = vmul.f32 0.5, %v1224_v62 }
 0x3d4   :  { %v1154_v54 = vpop.f32.mrf.mxu1 }
 0x3d5   :  { %v1155_v60 = vadd.f32 %v1154_v54, %v1064_v25  ;;  %v1226_v41 = vadd.f32 %v1160_v34, %v3539_v56  ;;  %v1239_v23 = vmul.f32 0.5, %v1223_v13  ;;  %v1069_v54 = vmul.f32 %v3973_v32, %v3531_v52 }
 0x3d6   :  { %v2761_v9 = vpop.f32.mrf.mxu1  ;;  %v1068_v34 = vmul.f32 %v3973_v32, %v4633_v43  ;;  %3032 = vtanh.f32 %v1240_v20  ;;  %v1070_v20 = vmul.f32 %v3973_v32, %v4637_v16 }
 0x3d7   :  { %v1170_v58 = vadd.f32 %v2761_v9, %v1067_v5  ;;  %v1225_v17 = vadd.f32 %v1155_v60, %v3549_v61  ;;  %v1242_v25 = vmul.f32 0.5, %v1226_v41  ;;  %3034 = vtanh.f32 %v1239_v23 }
 0x3d8   :  { %v1164_v4 = vpop.f32.mrf.mxu1 }
 0x3d9   :  { %v1228_v51 = vadd.f32 %v1170_v58, %v3557_v1  ;;  %v1165_v6 = vadd.f32 %v1164_v4, %v1066_v50  ;;  %v1241_v13 = vmul.f32 0.5, %v1225_v17  ;;  %v1071_v58 = vmul.f32 %v3973_v32, %v4635_v28 }
 0x3da   :  { %v2764_v55 = vpop.f32.mrf.mxu1 }
 0x3db   :  { %v1256_v62 = vmul.f32 0.5, %v1228_v51  ;;  %v1227_v5 = vadd.f32 %v1165_v6, %v4634_v37  ;;  %v1180_v9 = vadd.f32 %v2764_v55, %v1069_v54  ;;  %v1073_v6 = vmul.f32 %v3973_v32, %v4639_v18 }
 0x3dc   :  { %v1174_v60 = vpop.f32.mrf.mxu1 }
 0x3dd   :  { %3036 = vtanh.f32 %v1256_v62  ;;  %v1255_v50 = vmul.f32 0.5, %v1227_v5  ;;  %v1230_v4 = vadd.f32 %v1180_v9, %v4636_v49  ;;  %v1175_v41 = vadd.f32 %v1174_v60, %v1068_v34 }
 0x3de   :  { %3038 = vtanh.f32 %v1242_v25  ;;  %v2767_v52 = vpop.f32.mrf.mxu1  ;;  %v1072_v60 = vmul.f32 %v3973_v32, %v4642_v47 }
 0x3df   :  { %3040 = vtanh.f32 %v1255_v50  ;;  %v1258_v51 = vmul.f32 0.5, %v1230_v4  ;;  %v1229_v55 = vadd.f32 %v1175_v41, %v4638_v10  ;;  %v1190_v23 = vadd.f32 %v2767_v52, %v1071_v58 }
 0x3e0   :  { %3042 = vtanh.f32 %v1241_v13  ;;  %v1184_v17 = vpop.f32.mrf.mxu1  ;;  %v1075_v4 = vmul.f32 %v3973_v32, %v4644_v24 }
 0x3e1   :  { %3044 = vtanh.f32 %v1258_v51  ;;  %v1257_v54 = vmul.f32 0.5, %v1229_v55  ;;  %v1232_v62 = vadd.f32 %v1190_v23, %v4640_v22  ;;  %v1185_v34 = vadd.f32 %v1184_v17, %v1070_v20 }
 0x3e2   :  { %v2770_v25 = vpop.f32.mrf.mxu1 }
 0x3e3   :  { %3046 = vtanh.f32 %v1257_v54  ;;  %v1231_v5 = vadd.f32 %v1185_v34, %v4641_v30  ;;  %v1200_v9 = vadd.f32 %v2770_v25, %v1073_v6  ;;  %v3033_v41 = vpop.eup %3032  ;;  %v1074_v6 = vmul.f32 %v3973_v32, %v4646_v45 }
 0x3e4   :  { %3048 = vtanh.f32 %v1232_v62  ;;  %v1194_v52 = vpop.f32.mrf.mxu1  ;;  %v3035_v55 = vpop.eup %3034  ;;  %v1077_v54 = vmul.f32 %v3973_v32, %v4647_v38  ;;  %v1248_v25 = vmul.f32 0.5, %v3033_v41 }
 0x3e5   :  { %3050 = vtanh.f32 %v1231_v5  ;;  %v1234_v13 = vadd.f32 %v1200_v9, %v4643_v31  ;;  %v1195_v58 = vadd.f32 %v1194_v52, %v1072_v60  ;;  %v1247_v60 = vmul.f32 0.5, %v3035_v55 }
 0x3e6   :  { %v2773_v50 = vpop.f32.mrf.mxu1  ;;  %v1252_v30 = vadd.f32 0.5, %v1248_v25 }
 0x3e7   :  { %3052 = vtanh.f32 %v1234_v13  ;;  %v1233_v20 = vadd.f32 %v1195_v58, %v4645_v40  ;;  %v1210_v23 = vadd.f32 %v2773_v50, %v1075_v4  ;;  %v1076_v58 = vmul.f32 %v3973_v32, %v4648_v21  ;;  %v4651_v40 = vld [vmem:[#allocation31_spill] sm:$0xff] }
 0x3e8   :  { %v1204_v51 = vpop.f32.mrf.mxu1 }
 0x3e9   :  { %3054 = vtanh.f32 %v1233_v20  ;;  %v1205_v52 = vadd.f32 %v1204_v51, %v1074_v6  ;;  %v1236_v24 = vadd.f32 %v1210_v23, %v4651_v40  ;;  %v1251_v51 = vadd.f32 0.5, %v1247_v60 }
 0x3ea   :  { %v3037_v17 = vpop.eup %3036  ;;  %v2776_v62 = vpop.f32.mrf.mxu1 }
 0x3eb   :  { %v3039_v34 = vpop.eup %3038  ;;  %v1264_v5 = vmul.f32 0.5, %v3037_v17  ;;  %v1220_v13 = vadd.f32 %v2776_v62, %v1077_v54  ;;  %v1235_v6 = vadd.f32 %v1205_v52, %v3640_v63  ;;  %v1276_v40 = vmul.f32 0.5, %v1236_v24 }
 0x3ec   :  { %v3041_v9 = vpop.eup %3040  ;;  %v1214_v50 = vpop.f32.mrf.mxu1  ;;  %v1250_v41 = vmul.f32 0.5, %v3039_v34 }
 0x3ed   :  { %v3043_v4 = vpop.eup %3042  ;;  %v1263_v20 = vmul.f32 0.5, %v3041_v9  ;;  %v1268_v31 = vadd.f32 0.5, %v1264_v5  ;;  %v1238_v38 = vadd.f32 %v1220_v13, %v4631_v11  ;;  %v1215_v47 = vadd.f32 %v1214_v50, %v1076_v58 }
 0x3ee   :  { %v3045_v45 = vpop.eup %3044  ;;  %v1249_v9 = vmul.f32 0.5, %v3043_v4  ;;  %v1254_v25 = vadd.f32 0.5, %v1250_v41 }
 0x3ef   :  { %v1267_v17 = vadd.f32 0.5, %v1263_v20  ;;  %v1266_v22 = vmul.f32 0.5, %v3045_v45  ;;  %v1278_v54 = vmul.f32 0.5, %v1238_v38  ;;  %v1237_v32 = vadd.f32 %v1215_v47, %v4632_v27 }
 0x3f0   :  { %v3047_v55 = vpop.eup %3046  ;;  %v1292_v13 = vmul.f32 %v1268_v31, %v3844_v57  ;;  %v1275_v47 = vmul.f32 0.5, %v1235_v6  ;;  %v1253_v20 = vadd.f32 0.5, %v1249_v9 }
 0x3f1   :  { %v3049_v62 = vpop.eup %3048  ;;  %v1270_v21 = vadd.f32 0.5, %v1266_v22  ;;  %v1265_v23 = vmul.f32 0.5, %v3047_v55  ;;  %3056 = vtanh.f32 %v1278_v54  ;;  %v1277_v34 = vmul.f32 0.5, %v1237_v32 }
 0x3f2   :  { %v3051_v5 = vpop.eup %3050  ;;  %v1296_v58 = vmul.f32 %v3049_v62, %v1252_v30  ;;  %v1291_v45 = vmul.f32 %v1267_v17, %v3847_v2 }
 0x3f3   :  { %v1295_v60 = vmul.f32 %v3051_v5, %v1251_v51  ;;  %v1269_v52 = vadd.f32 0.5, %v1265_v23  ;;  %3058 = vtanh.f32 %v1277_v34  ;;  %v1294_v22 = vmul.f32 %v1270_v21, %v3849_v7 }
 0x3f4   :  { %v3053_v50 = vpop.eup %3052  ;;  %v4025_v38 = vadd.f32 %v1296_v58, %v1292_v13  ;;  %3060 = vtanh.f32 %v1276_v40 }
 0x3f5   :  { %v4028_v4 = vadd.f32 %v1295_v60, %v1291_v45  ;;  %v1298_v24 = vmul.f32 %v3053_v50, %v1254_v25  ;;  %v1293_v57 = vmul.f32 %v1269_v52, %v3853_v53  ;;  %3062 = vtanh.f32 %v1275_v47  ;;  %v4652_v50 = vld [vmem:[#allocation28_spill] sm:$0xff]  ;;  %v4074_v52 = vld [vmem:[%s4505_s0 + $0x4] ss:$0 sm:$0xff] }
 0x3f6   :  { %v3055_v30 = vpop.eup %3054  ;;  %v4653_v47 = vld [vmem:[#allocation11_spill] sm:$0xff] }
 0x3f7   :  { %v4030_v31 = vadd.f32 %v1298_v24, %v1294_v22  ;;  %v1297_v2 = vmul.f32 %v3055_v30, %v1253_v20  ;;  %v1317_v22 = vmul.f32 %v4074_v52, %v4653_v47  ;;  %v4654_v30 = vld [vmem:[#allocation14_spill] sm:$0xff] }
 0x3f9   :  { %3064 = vtanh.f32 %v4030_v31  ;;  %v4034_v41 = vadd.f32 %v1297_v2, %v1293_v57  ;;  %v1316_v57 = vmul.f32 %v4074_v52, %v4654_v30 }
 0x3fa   :  { %3066 = vtanh.f32 %v4025_v38 }
 0x3fb   :  { %3068 = vtanh.f32 %v4034_v41 }
 0x3fc   :  { %3070 = vtanh.f32 %v4028_v4 }
 0x3fe   :  { %v3057_v21 = vpop.eup %3056 }
 0x3ff   :  { %v1286_v40 = vmul.f32 0.5, %v3057_v21 }
 0x400   :  { %v3059_v7 = vpop.eup %3058 }
 0x401   :  { %v3061_v17 = vpop.eup %3060  ;;  %v1285_v55 = vmul.f32 0.5, %v3059_v7  ;;  %v1290_v6 = vadd.f32 0.5, %v1286_v40  ;;  %v4655_v7 = vld [vmem:[#allocation7_spill] sm:$0xff] }
 0x402   :  { %v3063_v51 = vpop.eup %3062  ;;  %v1284_v54 = vmul.f32 0.5, %v3061_v17  ;;  %v1319_v40 = vmul.f32 %v4074_v52, %v4655_v7 }
 0x403   :  { %v1289_v9 = vadd.f32 0.5, %v1285_v55  ;;  %v1283_v23 = vmul.f32 0.5, %v3063_v51 }
 0x404   :  { %v1288_v58 = vadd.f32 0.5, %v1284_v54 }
 0x405   :  { %v1287_v45 = vadd.f32 0.5, %v1283_v23 }
 0x406   :  { %v3065_v53 = vpop.eup %3064 }
 0x407   :  { %v1310_v32 = vmul.f32 %v3065_v53, %v1290_v6  ;;  %v3067_v62 = vpop.eup %3066  ;;  %v4656_v6 = vld [vmem:[#allocation8_spill] sm:$0xff] }
 0x408   :  { %v3069_v5 = vpop.eup %3068  ;;  %v1308_v25 = vmul.f32 %v3067_v62, %v1288_v58  ;;  %v1318_v53 = vmul.f32 %v4074_v52, %v4656_v6 }
 0x409   :  { %2777 = vmatprep.subr.mxu0 %v1310_v32  ;;  %v1309_v13 = vmul.f32 %v3069_v5, %v1289_v9  ;;  %v3071_v34 = vpop.eup %3070  ;;  %v4657_v9 = vld [vmem:[#allocation12_spill] sm:$0xff] }
 0x40a   :  { %2778 = vmatpush3.msra.mxu0 %v1310_v32  ;;  %v1307_v60 = vmul.f32 %v3071_v34, %v1287_v45  ;;  %v1321_v23 = vmul.f32 %v4074_v52, %v4657_v9 }
 0x40b   :  { %2779 = vmatprep.subr.mxu0 %v1309_v13 }
 0x40c   :  { %2780 = vmatpush3.msra.mxu0 %v1309_v13 }
 0x40d   :  { %2781 = vmatprep.subr.mxu0 %v1308_v25 }
 0x40e   :  { %2782 = vmatpush3.msra.mxu0 %v1308_v25  ;;  %v1320_v25 = vmul.f32 %v4074_v52, %v3545_v59 }
 0x40f   :  { %2783 = vmatprep.subr.mxu0 %v1307_v60 }
 0x410   :  { %2784 = vmatpush3.msra.mxu0 %v1307_v60 }
 0x411   :  { %2786 = vmatmul.mubr.msk.f32.vlgmr.msra.gmra.mxu0 %vm267_vm0, %v3861_v29 }
 0x412   :  { %2788 = vmatprep.mubr.msk.f32.mxu0 %vm267_vm0, %v3868_v14 }
 0x415   :  { %2789 = vmatmul.mubr.msk.f32.gmra.mxu0 %vm267_vm0, %v3875_v35 }
 0x416   :  { %2791 = vmatprep.mubr.msk.f32.mxu0 %vm267_vm0, %v3882_v26 }
 0x419   :  { %2792 = vmatmul.mubr.msk.f32.gmra.mxu0 %vm267_vm0, %v3889_v48 }
 0x41a   :  { %2794 = vmatprep.mubr.msk.f32.mxu0 %vm267_vm0, %v3896_v46 }
 0x41d   :  { %2795 = vmatmul.mubr.msk.f32.gmra.mxu0 %vm267_vm0, %v3903_v44 }
 0x41e   :  { %2797 = vmatprep.mubr.msk.f32.mxu0 %vm267_vm0, %v3910_v12 }
 0x421   :  { %2798 = vmatmul.mubr.msk.f32.gmra.mxu0 %vm267_vm0, %v3917_v19 }
 0x422   :  { %2800 = vmatprep.mubr.msk.f32.mxu0 %vm267_vm0, %v3924_v8 }
 0x425   :  { %2801 = vmatmul.mubr.msk.f32.gmra.mxu0 %vm267_vm0, %v3931_v42 }
 0x426   :  { %2803 = vmatprep.mubr.msk.f32.mxu0 %vm267_vm0, %v3938_v33 }
 0x429   :  { %2804 = vmatmul.mubr.msk.f32.gmra.mxu0 %vm267_vm0, %v3945_v36 }
 0x42a   :  { %2806 = vmatprep.mubr.msk.f32.mxu0 %vm267_vm0, %v3952_v39 }
 0x42d   :  { %2807 = vmatmul.mubr.msk.f32.gmra.mxu0 %vm267_vm0, %v3959_v15 }
 0x42e   :  { %2849 = vmatprep.mubr.msk.f32.mxu0 %vm267_vm0, %v4652_v50 }
 0x4d1   :  { %v2787_v24 = vpop.f32.mrf.mxu0 }
 0x4d2   :  { %v1404_v20 = vadd.f32 %v2787_v24, %v1317_v22 }
 0x4d3   :  { %v1398_v2 = vpop.f32.mrf.mxu0 }
 0x4d4   :  { %v1399_v21 = vadd.f32 %v1398_v2, %v1316_v57  ;;  %v1478_v55 = vadd.f32 %v1404_v20, %v3555_v0  ;;  %v4658_v57 = vld [vmem:[#allocation9_spill] sm:$0xff] }
 0x4d5   :  { %v2790_v17 = vpop.f32.mrf.mxu0  ;;  %v1323_v2 = vmul.f32 %v4074_v52, %v4658_v57 }
 0x4d6   :  { %v1414_v51 = vadd.f32 %v2790_v17, %v1319_v40  ;;  %v1477_v54 = vadd.f32 %v1399_v21, %v3561_v3  ;;  %v1494_v58 = vmul.f32 0.5, %v1478_v55  ;;  %v1322_v17 = vmul.f32 %v4074_v52, %v4633_v43 }
 0x4d7   :  { %v1408_v32 = vpop.f32.mrf.mxu0 }
 0x4d8   :  { %v1409_v62 = vadd.f32 %v1408_v32, %v1318_v53  ;;  %v1480_v5 = vadd.f32 %v1414_v51, %v3539_v56  ;;  %v1493_v45 = vmul.f32 0.5, %v1477_v54  ;;  %3072 = vtanh.f32 %v1494_v58 }
 0x4d9   :  { %v2793_v13 = vpop.f32.mrf.mxu0  ;;  %v1324_v58 = vmul.f32 %v4074_v52, %v4637_v16 }
 0x4da   :  { %v1424_v34 = vadd.f32 %v2793_v13, %v1321_v23  ;;  %v1479_v60 = vadd.f32 %v1409_v62, %v3549_v61  ;;  %v1496_v21 = vmul.f32 0.5, %v1480_v5  ;;  %3074 = vtanh.f32 %v1493_v45 }
 0x4db   :  { %v1418_v22 = vpop.f32.mrf.mxu0  ;;  %v1325_v62 = vmul.f32 %v4074_v52, %v4635_v28 }
 0x4dc   :  { %v1482_v24 = vadd.f32 %v1424_v34, %v3557_v1  ;;  %v1419_v20 = vadd.f32 %v1418_v22, %v1320_v25  ;;  %v1495_v54 = vmul.f32 0.5, %v1479_v60 }
 0x4dd   :  { %v2796_v40 = vpop.f32.mrf.mxu0 }
 0x4de   :  { %v1510_v55 = vmul.f32 0.5, %v1482_v24  ;;  %v1481_v51 = vadd.f32 %v1419_v20, %v4634_v37  ;;  %v1434_v53 = vadd.f32 %v2796_v40, %v1323_v2  ;;  %v1327_v24 = vmul.f32 %v4074_v52, %v4639_v18  ;;  %v4659_v2 = vld [vmem:[#allocation23_spill] sm:$0xff] }
 0x4df   :  { %v1428_v32 = vpop.f32.mrf.mxu0 }
 0x4e0   :  { %3076 = vtanh.f32 %v1510_v55  ;;  %v1509_v23 = vmul.f32 0.5, %v1481_v51  ;;  %v1484_v13 = vadd.f32 %v1434_v53, %v4636_v49  ;;  %v1429_v5 = vadd.f32 %v1428_v32, %v1322_v17  ;;  %v4660_v55 = vld [vmem:[#allocation24_spill] sm:$0xff]  ;;  %v4661_v32 = vld [vmem:[#allocation17_spill] sm:$0xff] }
 0x4e1   :  { %3078 = vtanh.f32 %v1496_v21  ;;  %v2799_v34 = vpop.f32.mrf.mxu0 }
 0x4e2   :  { %3080 = vtanh.f32 %v1509_v23  ;;  %v1512_v25 = vmul.f32 0.5, %v1484_v13  ;;  %v1483_v22 = vadd.f32 %v1429_v5, %v4638_v10  ;;  %v1444_v45 = vadd.f32 %v2799_v34, %v1325_v62  ;;  %v4668_v10 = vld [vmem:[#allocation31_spill] sm:$0xff] }
 0x4e3   :  { %3082 = vtanh.f32 %v1495_v54  ;;  %v1438_v60 = vpop.f32.mrf.mxu0  ;;  %v1326_v23 = vmul.f32 %v4074_v52, %v4661_v32  ;;  %v4662_v54 = vld [vmem:[#allocation20_spill] sm:$0xff] }
 0x4e4   :  { %3084 = vtanh.f32 %v1512_v25  ;;  %v1511_v20 = vmul.f32 0.5, %v1483_v22  ;;  %v1486_v40 = vadd.f32 %v1444_v45, %v4659_v2  ;;  %v1439_v17 = vadd.f32 %v1438_v60, %v1324_v58  ;;  %v4663_v25 = vld [vmem:[#allocation27_spill] sm:$0xff]  ;;  %v4664_v45 = vld [vmem:[#allocation22_spill] sm:$0xff] }
 0x4e5   :  { %v2802_v21 = vpop.f32.mrf.mxu0  ;;  %v1329_v22 = vmul.f32 %v4074_v52, %v4663_v25  ;;  %v3073_v58 = vpop.eup %3072 }
 0x4e6   :  { %3086 = vtanh.f32 %v1511_v20  ;;  %v1485_v51 = vadd.f32 %v1439_v17, %v4660_v55  ;;  %v1454_v53 = vadd.f32 %v2802_v21, %v1327_v24  ;;  %v4665_v21 = vld [vmem:[#allocation29_spill] sm:$0xff] }
 0x4e7   :  { %3088 = vtanh.f32 %v1486_v40  ;;  %v1448_v62 = vpop.f32.mrf.mxu0  ;;  %v3075_v17 = vpop.eup %3074  ;;  %v1328_v32 = vmul.f32 %v4074_v52, %v4665_v21 }
 0x4e8   :  { %3090 = vtanh.f32 %v1485_v51  ;;  %v1488_v13 = vadd.f32 %v1454_v53, %v4662_v54  ;;  %v1449_v5 = vadd.f32 %v1448_v62, %v1326_v23  ;;  %v4666_v51 = vld [vmem:[#allocation25_spill] sm:$0xff]  ;;  %v1501_v25 = vmul.f32 0.5, %v3075_v17 }
 0x4e9   :  { %v2805_v34 = vpop.f32.mrf.mxu0  ;;  %v1331_v53 = vmul.f32 %v4074_v52, %v4666_v51 }
 0x4ea   :  { %3092 = vtanh.f32 %v1488_v13  ;;  %v1487_v60 = vadd.f32 %v1449_v5, %v4664_v45  ;;  %v1464_v24 = vadd.f32 %v2805_v34, %v1329_v22  ;;  %v1502_v13 = vmul.f32 0.5, %v3073_v58  ;;  %v4667_v5 = vld [vmem:[#allocation26_spill] sm:$0xff] }
 0x4eb   :  { %v1458_v20 = vpop.f32.mrf.mxu0  ;;  %v1330_v45 = vmul.f32 %v4074_v52, %v4667_v5 }
 0x4ec   :  { %3094 = vtanh.f32 %v1487_v60  ;;  %v1459_v2 = vadd.f32 %v1458_v20, %v1328_v32  ;;  %v1490_v16 = vadd.f32 %v1464_v24, %v4668_v10  ;;  %v1506_v37 = vadd.f32 0.5, %v1502_v13 }
 0x4ed   :  { %v3077_v40 = vpop.eup %3076  ;;  %v2808_v23 = vpop.f32.mrf.mxu0  ;;  %v1505_v32 = vadd.f32 0.5, %v1501_v25 }
 0x4ee   :  { %v3079_v62 = vpop.eup %3078  ;;  %v1518_v54 = vmul.f32 0.5, %v3077_v40  ;;  %v1474_v18 = vadd.f32 %v2808_v23, %v1331_v53  ;;  %v1489_v20 = vadd.f32 %v1459_v2, %v3640_v63  ;;  %v1530_v10 = vmul.f32 0.5, %v1490_v16 }
 0x4ef   :  { %v3081_v55 = vpop.eup %3080  ;;  %v1468_v34 = vpop.f32.mrf.mxu0  ;;  %v1504_v58 = vmul.f32 0.5, %v3079_v62 }
 0x4f0   :  { %v3083_v22 = vpop.eup %3082  ;;  %v1517_v60 = vmul.f32 0.5, %v3081_v55  ;;  %v1522_v49 = vadd.f32 0.5, %v1518_v54  ;;  %v1492_v51 = vadd.f32 %v1474_v18, %v4631_v11  ;;  %v1469_v28 = vadd.f32 %v1468_v34, %v1330_v45 }
 0x4f1   :  { %v3085_v21 = vpop.eup %3084  ;;  %v1503_v55 = vmul.f32 0.5, %v3083_v22  ;;  %v1508_v13 = vadd.f32 0.5, %v1504_v58 }
 0x4f2   :  { %v1521_v40 = vadd.f32 0.5, %v1517_v60  ;;  %v1520_v43 = vmul.f32 0.5, %v3085_v21  ;;  %v1532_v53 = vmul.f32 0.5, %v1492_v51  ;;  %v1491_v52 = vadd.f32 %v1469_v28, %v4632_v27 }
 0x4f3   :  { %v3087_v17 = vpop.eup %3086  ;;  %v1546_v18 = vmul.f32 %v1522_v49, %v4025_v38  ;;  %v1529_v28 = vmul.f32 0.5, %v1489_v20  ;;  %v1507_v60 = vadd.f32 0.5, %v1503_v55 }
 0x4f4   :  { %v3089_v23 = vpop.eup %3088  ;;  %v1524_v5 = vadd.f32 0.5, %v1520_v43  ;;  %v1519_v24 = vmul.f32 0.5, %v3087_v17  ;;  %3096 = vtanh.f32 %v1532_v53  ;;  %v1531_v62 = vmul.f32 0.5, %v1491_v52 }
 0x4f5   :  { %v3091_v54 = vpop.eup %3090  ;;  %v1550_v45 = vmul.f32 %v3089_v23, %v1506_v37  ;;  %v1545_v21 = vmul.f32 %v1521_v40, %v4028_v4 }
 0x4f6   :  { %v1549_v25 = vmul.f32 %v3091_v54, %v1505_v32  ;;  %v1523_v2 = vadd.f32 0.5, %v1519_v24  ;;  %3098 = vtanh.f32 %v1531_v62  ;;  %v1548_v43 = vmul.f32 %v1524_v5, %v4030_v31 }
 0x4f7   :  { %v3093_v34 = vpop.eup %3092  ;;  %v4126_v51 = vadd.f32 %v1550_v45, %v1546_v18  ;;  %3100 = vtanh.f32 %v1530_v10 }
 0x4f8   :  { %v4129_v22 = vadd.f32 %v1549_v25, %v1545_v21  ;;  %v1552_v16 = vmul.f32 %v3093_v34, %v1508_v13  ;;  %v1547_v38 = vmul.f32 %v1523_v2, %v4034_v41  ;;  %3102 = vtanh.f32 %v1529_v28 }
 0x4f9   :  { %v3095_v37 = vpop.eup %3094 }
 0x4fa   :  { %v4131_v49 = vadd.f32 %v1552_v16, %v1548_v43  ;;  %v1551_v4 = vmul.f32 %v3095_v37, %v1507_v60 }
 0x4fc   :  { %3104 = vtanh.f32 %v4131_v49  ;;  %v4135_v58 = vadd.f32 %v1551_v4, %v1547_v38 }
 0x4fd   :  { %3106 = vtanh.f32 %v4126_v51 }
 0x4fe   :  { %3108 = vtanh.f32 %v4135_v58 }
 0x4ff   :  { %3110 = vtanh.f32 %v4129_v22 }
 0x501   :  { %v3097_v31 = vpop.eup %3096 }
 0x502   :  { %v1540_v10 = vmul.f32 0.5, %v3097_v31 }
 0x503   :  { %v3099_v5 = vpop.eup %3098 }
 0x504   :  { %v3101_v40 = vpop.eup %3100  ;;  %v1539_v17 = vmul.f32 0.5, %v3099_v5  ;;  %v1544_v20 = vadd.f32 0.5, %v1540_v10 }
 0x505   :  { %v3103_v32 = vpop.eup %3102  ;;  %v1538_v53 = vmul.f32 0.5, %v3101_v40 }
 0x506   :  { %v1543_v55 = vadd.f32 0.5, %v1539_v17  ;;  %v1537_v24 = vmul.f32 0.5, %v3103_v32  ;;  %v4669_v17 = vld [vmem:[#allocation10_spill] sm:$0xff] }
 0x507   :  { %v1542_v45 = vadd.f32 0.5, %v1538_v53 }
 0x508   :  { %v1541_v21 = vadd.f32 0.5, %v1537_v24  ;;  %v4671_v24 = vld [vmem:[#allocation18_spill] sm:$0xff] }
 0x509   :  { %v3105_v41 = vpop.eup %3104 }
 0x50a   :  { %v1564_v52 = vmul.f32 %v3105_v41, %v1544_v20  ;;  %v3107_v23 = vpop.eup %3106  ;;  %v4670_v41 = vld [vmem:[#allocation19_spill] sm:$0xff] }
 0x50b   :  { %v3109_v54 = vpop.eup %3108  ;;  %v1562_v13 = vmul.f32 %v3107_v23, %v1542_v45  ;;  %v4672_v45 = vld [vmem:[#allocation13_spill] sm:$0xff] }
 0x50c   :  { %2809 = vmatprep.subr.mxu1 %v1564_v52  ;;  %v1563_v18 = vmul.f32 %v3109_v54, %v1543_v55  ;;  %v3111_v62 = vpop.eup %3110 }
 0x50d   :  { %2810 = vmatpush3.msra.mxu1 %v1564_v52  ;;  %v1561_v25 = vmul.f32 %v3111_v62, %v1541_v21 }
 0x50e   :  { %2811 = vmatprep.subr.mxu1 %v1563_v18 }
 0x50f   :  { %2812 = vmatpush3.msra.mxu1 %v1563_v18 }
 0x510   :  { %2813 = vmatprep.subr.mxu1 %v1562_v13 }
 0x511   :  { %2814 = vmatpush3.msra.mxu1 %v1562_v13 }
 0x512   :  { %2815 = vmatprep.subr.mxu1 %v1561_v25 }
 0x513   :  { %2816 = vmatpush3.msra.mxu1 %v1561_v25  ;;  %v4673_v25 = vld [vmem:[#allocation21_spill] sm:$0xff] }
 0x514   :  { %2818 = vmatmul.mubr.msk.f32.vlgmr.msra.gmra.mxu1 %vm267_vm0, %v3861_v29  ;;  %v4175_v29 = vld [vmem:[%s4505_s0 + $0x5] ss:$0 sm:$0xff] }
 0x515   :  { %2820 = vmatprep.mubr.msk.f32.mxu1 %vm267_vm0, %v3868_v14  ;;  %v1571_v14 = vmul.f32 %v4175_v29, %v4653_v47  ;;  %v1574_v16 = vmul.f32 %v4175_v29, %v3545_v59  ;;  %v1577_v5 = vmul.f32 %v4175_v29, %v4658_v57  ;;  %v1576_v32 = vmul.f32 %v4175_v29, %v4669_v17 }
 0x516   :  { %v1579_v54 = vmul.f32 %v4175_v29, %v4671_v24 }
 0x518   :  { %2821 = vmatmul.mubr.msk.f32.gmra.mxu1 %vm267_vm0, %v3875_v35 }
 0x519   :  { %2823 = vmatprep.mubr.msk.f32.mxu1 %vm267_vm0, %v3882_v26 }
 0x51c   :  { %2824 = vmatmul.mubr.msk.f32.gmra.mxu1 %vm267_vm0, %v3889_v48  ;;  %v1570_v48 = vmul.f32 %v4175_v29, %v4654_v30 }
 0x51d   :  { %2826 = vmatprep.mubr.msk.f32.mxu1 %vm267_vm0, %v3896_v46 }
 0x520   :  { %2827 = vmatmul.mubr.msk.f32.gmra.mxu1 %vm267_vm0, %v3903_v44 }
 0x521   :  { %2829 = vmatprep.mubr.msk.f32.mxu1 %vm267_vm0, %v3910_v12  ;;  %v1573_v12 = vmul.f32 %v4175_v29, %v4655_v7 }
 0x524   :  { %2830 = vmatmul.mubr.msk.f32.gmra.mxu1 %vm267_vm0, %v3917_v19 }
 0x525   :  { %2832 = vmatprep.mubr.msk.f32.mxu1 %vm267_vm0, %v3924_v8 }
 0x528   :  { %2833 = vmatmul.mubr.msk.f32.gmra.mxu1 %vm267_vm0, %v3931_v42 }
 0x529   :  { %2835 = vmatprep.mubr.msk.f32.mxu1 %vm267_vm0, %v3938_v33  ;;  %v1572_v33 = vmul.f32 %v4175_v29, %v4656_v6 }
 0x52c   :  { %2836 = vmatmul.mubr.msk.f32.gmra.mxu1 %vm267_vm0, %v3945_v36 }
 0x52d   :  { %2838 = vmatprep.mubr.msk.f32.mxu1 %vm267_vm0, %v3952_v39 }
 0x530   :  { %2839 = vmatmul.mubr.msk.f32.gmra.mxu1 %vm267_vm0, %v3959_v15 }
 0x531   :  { %2881 = vmatprep.mubr.msk.f32.mxu1 %vm267_vm0, %v4652_v50  ;;  %v1575_v50 = vmul.f32 %v4175_v29, %v4657_v9 }
 0x5d4   :  { %v2819_v35 = vpop.f32.mrf.mxu1 }
 0x5d5   :  { %v1658_v26 = vadd.f32 %v2819_v35, %v1571_v14  ;;  %v1578_v14 = vmul.f32 %v4175_v29, %v4673_v25 }
 0x5d6   :  { %v1652_v46 = vpop.f32.mrf.mxu1 }
 0x5d7   :  { %v1653_v44 = vadd.f32 %v1652_v46, %v1570_v48  ;;  %v1732_v8 = vadd.f32 %v1658_v26, %v3555_v0  ;;  %v4674_v26 = vld [vmem:[#allocation16_spill] sm:$0xff] }
 0x5d8   :  { %v2822_v19 = vpop.f32.mrf.mxu1 }
 0x5d9   :  { %v1668_v42 = vadd.f32 %v2822_v19, %v1573_v12  ;;  %v1731_v36 = vadd.f32 %v1653_v44, %v3561_v3  ;;  %v1748_v28 = vmul.f32 0.5, %v1732_v8  ;;  %v4675_v12 = vld [vmem:[#allocation15_spill] sm:$0xff] }
 0x5da   :  { %v1662_v39 = vpop.f32.mrf.mxu1  ;;  %v1581_v19 = vmul.f32 %v4175_v29, %v4675_v12 }
 0x5db   :  { %v1663_v15 = vadd.f32 %v1662_v39, %v1572_v33  ;;  %v1734_v34 = vadd.f32 %v1668_v42, %v3539_v56  ;;  %v1747_v60 = vmul.f32 0.5, %v1731_v36  ;;  %3112 = vtanh.f32 %v1748_v28  ;;  %v4676_v42 = vld [vmem:[#allocation23_spill] sm:$0xff] }
 0x5dc   :  { %v2825_v2 = vpop.f32.mrf.mxu1 }
 0x5dd   :  { %v1678_v43 = vadd.f32 %v2825_v2, %v1575_v50  ;;  %v1733_v37 = vadd.f32 %v1663_v15, %v3549_v61  ;;  %v1750_v10 = vmul.f32 0.5, %v1734_v34  ;;  %3114 = vtanh.f32 %v1747_v60  ;;  %v4677_v15 = vld [vmem:[#allocation24_spill] sm:$0xff]  ;;  %v4678_v2 = vld [vmem:[#allocation17_spill] sm:$0xff] }
 0x5de   :  { %v1672_v38 = vpop.f32.mrf.mxu1  ;;  %v1580_v28 = vmul.f32 %v4175_v29, %v4678_v2 }
 0x5df   :  { %v1736_v4 = vadd.f32 %v1678_v43, %v3557_v1  ;;  %v1673_v31 = vadd.f32 %v1672_v38, %v1574_v16  ;;  %v1749_v23 = vmul.f32 0.5, %v1733_v37  ;;  %v4679_v16 = vld [vmem:[#allocation20_spill] sm:$0xff] }
 0x5e0   :  { %v2828_v40 = vpop.f32.mrf.mxu1 }
 0x5e1   :  { %v1764_v20 = vmul.f32 0.5, %v1736_v4  ;;  %v1735_v53 = vadd.f32 %v1673_v31, %v4670_v41  ;;  %v1688_v52 = vadd.f32 %v2828_v40, %v1577_v5  ;;  %v4680_v4 = vld [vmem:[#allocation27_spill] sm:$0xff] }
 0x5e2   :  { %v1682_v55 = vpop.f32.mrf.mxu1  ;;  %v1583_v31 = vmul.f32 %v4175_v29, %v4680_v4 }
 0x5e3   :  { %3116 = vtanh.f32 %v1764_v20  ;;  %v1763_v18 = vmul.f32 0.5, %v1735_v53  ;;  %v1738_v62 = vadd.f32 %v1688_v52, %v4672_v45  ;;  %v1683_v13 = vadd.f32 %v1682_v55, %v1576_v32 }
 0x5e4   :  { %3118 = vtanh.f32 %v1750_v10  ;;  %v2831_v21 = vpop.f32.mrf.mxu1  ;;  %v4681_v10 = vld [vmem:[#allocation22_spill] sm:$0xff] }
 0x5e5   :  { %3120 = vtanh.f32 %v1763_v18  ;;  %v1766_v35 = vmul.f32 0.5, %v1738_v62  ;;  %v1737_v48 = vadd.f32 %v1683_v13, %v4674_v26  ;;  %v1698_v46 = vadd.f32 %v2831_v21, %v1579_v54  ;;  %v4683_v54 = vld [vmem:[#allocation25_spill] sm:$0xff] }
 0x5e6   :  { %3122 = vtanh.f32 %v1749_v23  ;;  %v1692_v44 = vpop.f32.mrf.mxu1  ;;  %v4682_v23 = vld [vmem:[#allocation29_spill] sm:$0xff]  ;;  %v1585_v18 = vmul.f32 %v4175_v29, %v4683_v54 }
 0x5e7   :  { %3124 = vtanh.f32 %v1766_v35  ;;  %v1765_v8 = vmul.f32 0.5, %v1737_v48  ;;  %v1740_v33 = vadd.f32 %v1698_v46, %v4676_v42  ;;  %v1693_v36 = vadd.f32 %v1692_v44, %v1578_v14 }
 0x5e8   :  { %v2834_v39 = vpop.f32.mrf.mxu1  ;;  %v3113_v5 = vpop.eup %3112  ;;  %v1582_v55 = vmul.f32 %v4175_v29, %v4682_v23 }
 0x5e9   :  { %3126 = vtanh.f32 %v1765_v8  ;;  %v1739_v50 = vadd.f32 %v1693_v36, %v4677_v15  ;;  %v1708_v34 = vadd.f32 %v2834_v39, %v1581_v19  ;;  %v1756_v21 = vmul.f32 0.5, %v3113_v5  ;;  %v4684_v19 = vld [vmem:[#allocation26_spill] sm:$0xff] }
 0x5ea   :  { %3128 = vtanh.f32 %v1740_v33  ;;  %v1702_v43 = vpop.f32.mrf.mxu1  ;;  %v3115_v20 = vpop.eup %3114  ;;  %v1584_v8 = vmul.f32 %v4175_v29, %v4684_v19 }
 0x5eb   :  { %3130 = vtanh.f32 %v1739_v50  ;;  %v1742_v60 = vadd.f32 %v1708_v34, %v4679_v16  ;;  %v1703_v37 = vadd.f32 %v1702_v43, %v1580_v28  ;;  %v1755_v48 = vmul.f32 0.5, %v3115_v20  ;;  %v4685_v50 = vld [vmem:[#allocation31_spill] sm:$0xff] }
 0x5ec   :  { %v2837_v38 = vpop.f32.mrf.mxu1 }
 0x5ed   :  { %3132 = vtanh.f32 %v1742_v60  ;;  %v1741_v40 = vadd.f32 %v1703_v37, %v4681_v10  ;;  %v1718_v53 = vadd.f32 %v2837_v38, %v1583_v31  ;;  %v1760_v38 = vadd.f32 0.5, %v1756_v21 }
 0x5ee   :  { %v1712_v32 = vpop.f32.mrf.mxu1 }
 0x5ef   :  { %3134 = vtanh.f32 %v1741_v40  ;;  %v1713_v46 = vadd.f32 %v1712_v32, %v1582_v55  ;;  %v1744_v34 = vadd.f32 %v1718_v53, %v4685_v50  ;;  %v1759_v32 = vadd.f32 0.5, %v1755_v48 }
 0x5f0   :  { %v3117_v52 = vpop.eup %3116  ;;  %v2840_v62 = vpop.f32.mrf.mxu1 }
 0x5f1   :  { %v3119_v13 = vpop.eup %3118  ;;  %v1772_v14 = vmul.f32 0.5, %v3117_v52  ;;  %v1728_v44 = vadd.f32 %v2840_v62, %v1585_v18  ;;  %v1743_v52 = vadd.f32 %v1713_v46, %v3640_v63  ;;  %v1784_v50 = vmul.f32 0.5, %v1744_v34 }
 0x5f2   :  { %v3121_v35 = vpop.eup %3120  ;;  %v1722_v33 = vpop.f32.mrf.mxu1  ;;  %v1758_v31 = vmul.f32 0.5, %v3119_v13 }
 0x5f3   :  { %v3123_v36 = vpop.eup %3122  ;;  %v1771_v39 = vmul.f32 0.5, %v3121_v35  ;;  %v1776_v43 = vadd.f32 0.5, %v1772_v14  ;;  %v1746_v60 = vadd.f32 %v1728_v44, %v4631_v11  ;;  %v1723_v37 = vadd.f32 %v1722_v33, %v1584_v8 }
 0x5f4   :  { %v3125_v28 = vpop.eup %3124  ;;  %v1757_v62 = vmul.f32 0.5, %v3123_v36  ;;  %v1762_v21 = vadd.f32 0.5, %v1758_v31 }
 0x5f5   :  { %v1775_v5 = vadd.f32 0.5, %v1771_v39  ;;  %v1774_v40 = vmul.f32 0.5, %v3125_v28  ;;  %v1786_v55 = vmul.f32 0.5, %v1746_v60  ;;  %v1745_v29 = vadd.f32 %v1723_v37, %v4632_v27 }
 0x5f6   :  { %v3127_v20 = vpop.eup %3126  ;;  %v1800_v44 = vmul.f32 %v1776_v43, %v4126_v51  ;;  %v1783_v60 = vmul.f32 0.5, %v1743_v52 }
 0x5f7   :  { %v3129_v18 = vpop.eup %3128  ;;  %v1778_v35 = vadd.f32 0.5, %v1774_v40  ;;  %v1773_v53 = vmul.f32 0.5, %v3127_v20  ;;  %3136 = vtanh.f32 %v1786_v55  ;;  %v1785_v13 = vmul.f32 0.5, %v1745_v29 }
 0x5f8   :  { %v3131_v14 = vpop.eup %3130  ;;  %v1804_v8 = vmul.f32 %v3129_v18, %v1760_v38  ;;  %v1799_v33 = vmul.f32 %v1775_v5, %v4129_v22  ;;  %v1761_v40 = vadd.f32 0.5, %v1757_v62 }
 0x5f9   :  { %v1803_v48 = vmul.f32 %v3131_v14, %v1759_v32  ;;  %v1777_v46 = vadd.f32 0.5, %v1773_v53  ;;  %3138 = vtanh.f32 %v1785_v13  ;;  %v1802_v36 = vmul.f32 %v1778_v35, %v4131_v49 }
 0x5fa   :  { %v3133_v39 = vpop.eup %3132  ;;  %v4227_v28 = vadd.f32 %v1804_v8, %v1800_v44  ;;  %3140 = vtanh.f32 %v1784_v50 }
 0x5fb   :  { %v4230_v37 = vadd.f32 %v1803_v48, %v1799_v33  ;;  %v1806_v34 = vmul.f32 %v3133_v39, %v1762_v21  ;;  %v1801_v38 = vmul.f32 %v1777_v46, %v4135_v58  ;;  %3142 = vtanh.f32 %v1783_v60  ;;  %v4244_v39 = vld [vmem:[%s4506_s1 + $0x8] sm:$0xff]  ;;  %v4251_v46 = vld [vmem:[%s4506_s1 + $0x10] sm:$0xff]  ;;  %v4258_v60 = vld [vmem:[%s4506_s1 + $0x18] sm:$0xff] }
 0x5fc   :  { %v3135_v51 = vpop.eup %3134 }
 0x5fd   :  { %v4232_v43 = vadd.f32 %v1806_v34, %v1802_v36  ;;  %v1805_v22 = vmul.f32 %v3135_v51, %v1761_v40  ;;  %v4265_v36 = vld [vmem:[%s4506_s1 + $0x20] sm:$0xff]  ;;  %v4272_v34 = vld [vmem:[%s4506_s1 + $0x28] sm:$0xff]  ;;  %v4279_v40 = vld [vmem:[%s4506_s1 + $0x30] sm:$0xff] }
 0x5fe   :  { %v4286_v51 = vld [vmem:[%s4506_s1 + $0x38] sm:$0xff] }
 0x5ff   :  { %3144 = vtanh.f32 %v4232_v43  ;;  %v4236_v31 = vadd.f32 %v1805_v22, %v1801_v38  ;;  %v4293_v38 = vld [vmem:[%s4506_s1 + $0x40] sm:$0xff]  ;;  %v4300_v22 = vld [vmem:[%s4506_s1 + $0x48] sm:$0xff] }
 0x600   :  { %3146 = vtanh.f32 %v4227_v28 }
 0x601   :  { %3148 = vtanh.f32 %v4236_v31 }
 0x602   :  { %3150 = vtanh.f32 %v4230_v37 }
 0x604   :  { %v3137_v49 = vpop.eup %3136 }
 0x605   :  { %v1794_v50 = vmul.f32 0.5, %v3137_v49  ;;  %v4307_v49 = vld [vmem:[%s4506_s1 + $0x50] sm:$0xff] }
 0x606   :  { %v3139_v5 = vpop.eup %3138 }
 0x607   :  { %v3141_v20 = vpop.eup %3140  ;;  %v1793_v32 = vmul.f32 0.5, %v3139_v5  ;;  %v1798_v55 = vadd.f32 0.5, %v1794_v50  ;;  %v4314_v5 = vld [vmem:[%s4506_s1 + $0x58] sm:$0xff]  ;;  %v4321_v50 = vld [vmem:[%s4506_s1 + $0x60] sm:$0xff] }
 0x608   :  { %v3143_v52 = vpop.eup %3142  ;;  %v1792_v29 = vmul.f32 0.5, %v3141_v20  ;;  %v4328_v20 = vld [vmem:[%s4506_s1 + $0x68] sm:$0xff] }
 0x609   :  { %v1797_v35 = vadd.f32 0.5, %v1793_v32  ;;  %v1791_v53 = vmul.f32 0.5, %v3143_v52  ;;  %v4335_v32 = vld [vmem:[%s4506_s1 + $0x70] sm:$0xff]  ;;  %v4342_v52 = vld [vmem:[%s4506_s1 + $0x78] sm:$0xff] }
 0x60a   :  { %v1796_v8 = vadd.f32 0.5, %v1792_v29 }
 0x60b   :  { %v1795_v33 = vadd.f32 0.5, %v1791_v53 }
 0x60c   :  { %v3145_v58 = vpop.eup %3144 }
 0x60d   :  { %v1818_v18 = vmul.f32 %v3145_v58, %v1798_v55  ;;  %v3147_v62 = vpop.eup %3146  ;;  %v4349_v55 = vld [vmem:[%s4505_s0 + $0x6] ss:$0 sm:$0xff] }
 0x60e   :  { %v3149_v14 = vpop.eup %3148  ;;  %v1816_v21 = vmul.f32 %v3147_v62, %v1796_v8  ;;  %v1825_v58 = vmul.f32 %v4349_v55, %v4653_v47  ;;  %v1824_v62 = vmul.f32 %v4349_v55, %v4654_v30 }
 0x60f   :  { %2841 = vmatprep.subr.mxu0 %v1818_v18  ;;  %v1817_v44 = vmul.f32 %v3149_v14, %v1797_v35  ;;  %v3151_v13 = vpop.eup %3150  ;;  %v1827_v14 = vmul.f32 %v4349_v55, %v4655_v7  ;;  %v1828_v7 = vmul.f32 %v4349_v55, %v3545_v59 }
 0x610   :  { %2842 = vmatpush3.msra.mxu0 %v1818_v18  ;;  %v1815_v48 = vmul.f32 %v3151_v13, %v1795_v33 }
 0x611   :  { %2843 = vmatprep.subr.mxu0 %v1817_v44 }
 0x612   :  { %2844 = vmatpush3.msra.mxu0 %v1817_v44 }
 0x613   :  { %2845 = vmatprep.subr.mxu0 %v1816_v21 }
 0x614   :  { %2846 = vmatpush3.msra.mxu0 %v1816_v21  ;;  %v1826_v21 = vmul.f32 %v4349_v55, %v4656_v6 }
 0x615   :  { %2847 = vmatprep.subr.mxu0 %v1815_v48 }
 0x616   :  { %2848 = vmatpush3.msra.mxu0 %v1815_v48 }
 0x617   :  { %2850 = vmatmul.mubr.msk.f32.vlgmr.msra.gmra.mxu0 %vm267_vm0, %v4244_v39 }
 0x618   :  { %2852 = vmatprep.mubr.msk.f32.mxu0 %vm267_vm0, %v4251_v46 }
 0x61b   :  { %2853 = vmatmul.mubr.msk.f32.gmra.mxu0 %vm267_vm0, %v4258_v60 }
 0x61c   :  { %2855 = vmatprep.mubr.msk.f32.mxu0 %vm267_vm0, %v4265_v36 }
 0x61f   :  { %2856 = vmatmul.mubr.msk.f32.gmra.mxu0 %vm267_vm0, %v4272_v34 }
 0x620   :  { %2858 = vmatprep.mubr.msk.f32.mxu0 %vm267_vm0, %v4279_v40 }
 0x623   :  { %2859 = vmatmul.mubr.msk.f32.gmra.mxu0 %vm267_vm0, %v4286_v51 }
 0x624   :  { %2861 = vmatprep.mubr.msk.f32.mxu0 %vm267_vm0, %v4293_v38 }
 0x627   :  { %2862 = vmatmul.mubr.msk.f32.gmra.mxu0 %vm267_vm0, %v4300_v22 }
 0x628   :  { %2864 = vmatprep.mubr.msk.f32.mxu0 %vm267_vm0, %v4307_v49 }
 0x62b   :  { %2865 = vmatmul.mubr.msk.f32.gmra.mxu0 %vm267_vm0, %v4314_v5 }
 0x62c   :  { %2867 = vmatprep.mubr.msk.f32.mxu0 %vm267_vm0, %v4321_v50 }
 0x62f   :  { %2868 = vmatmul.mubr.msk.f32.gmra.mxu0 %vm267_vm0, %v4328_v20 }
 0x630   :  { %2870 = vmatprep.mubr.msk.f32.mxu0 %vm267_vm0, %v4335_v32 }
 0x633   :  { %2871 = vmatmul.mubr.msk.f32.gmra.mxu0 %vm267_vm0, %v4342_v52 }
 0x6d7   :  { %v2851_v29 = vpop.f32.mrf.mxu0 }
 0x6d8   :  { %v1912_v18 = vadd.f32 %v2851_v29, %v1825_v58  ;;  %v1829_v58 = vmul.f32 %v4349_v55, %v4657_v9 }
 0x6d9   :  { %v1906_v35 = vpop.f32.mrf.mxu0 }
 0x6da   :  { %v1907_v53 = vadd.f32 %v1906_v35, %v1824_v62  ;;  %v1986_v8 = vadd.f32 %v1912_v18, %v3555_v0 }
 0x6db   :  { %v2854_v44 = vpop.f32.mrf.mxu0 }
 0x6dc   :  { %v1922_v13 = vadd.f32 %v2854_v44, %v1827_v14  ;;  %v1985_v33 = vadd.f32 %v1907_v53, %v3561_v3  ;;  %v2002_v35 = vmul.f32 0.5, %v1986_v8 }
 0x6dd   :  { %v1916_v48 = vpop.f32.mrf.mxu0 }
 0x6de   :  { %v1917_v47 = vadd.f32 %v1916_v48, %v1826_v21  ;;  %v1988_v29 = vadd.f32 %v1922_v13, %v3539_v56  ;;  %v2001_v18 = vmul.f32 0.5, %v1985_v33  ;;  %v1831_v21 = vmul.f32 %v4349_v55, %v4658_v57 }
 0x6df   :  { %v2857_v62 = vpop.f32.mrf.mxu0  ;;  %v1830_v13 = vmul.f32 %v4349_v55, %v4669_v17  ;;  %3152 = vtanh.f32 %v2002_v35  ;;  %v1832_v35 = vmul.f32 %v4349_v55, %v4673_v25 }
 0x6e0   :  { %v1932_v30 = vadd.f32 %v2857_v62, %v1829_v58  ;;  %v1987_v14 = vadd.f32 %v1917_v47, %v3549_v61  ;;  %v2004_v48 = vmul.f32 0.5, %v1988_v29  ;;  %3154 = vtanh.f32 %v2001_v18 }
 0x6e1   :  { %v1926_v44 = vpop.f32.mrf.mxu0 }
 0x6e2   :  { %v1990_v6 = vadd.f32 %v1932_v30, %v3557_v1  ;;  %v1927_v53 = vadd.f32 %v1926_v44, %v1828_v7  ;;  %v2003_v33 = vmul.f32 0.5, %v1987_v14  ;;  %v1833_v30 = vmul.f32 %v4349_v55, %v4671_v24 }
 0x6e3   :  { %v2860_v9 = vpop.f32.mrf.mxu0 }
 0x6e4   :  { %v2018_v8 = vmul.f32 0.5, %v1990_v6  ;;  %v1989_v58 = vadd.f32 %v1927_v53, %v4670_v41  ;;  %v1942_v62 = vadd.f32 %v2860_v9, %v1831_v21  ;;  %v1835_v53 = vmul.f32 %v4349_v55, %v4675_v12 }
 0x6e5   :  { %v1936_v47 = vpop.f32.mrf.mxu0 }
 0x6e6   :  { %3156 = vtanh.f32 %v2018_v8  ;;  %v2017_v7 = vmul.f32 0.5, %v1989_v58  ;;  %v1992_v44 = vadd.f32 %v1942_v62, %v4672_v45  ;;  %v1937_v29 = vadd.f32 %v1936_v47, %v1830_v13 }
 0x6e7   :  { %3158 = vtanh.f32 %v2004_v48  ;;  %v2863_v57 = vpop.f32.mrf.mxu0  ;;  %v1834_v47 = vmul.f32 %v4349_v55, %v4678_v2 }
 0x6e8   :  { %3160 = vtanh.f32 %v2017_v7  ;;  %v2020_v6 = vmul.f32 0.5, %v1992_v44  ;;  %v1991_v9 = vadd.f32 %v1937_v29, %v4674_v26  ;;  %v1952_v18 = vadd.f32 %v2863_v57, %v1833_v30 }
 0x6e9   :  { %3162 = vtanh.f32 %v2003_v33  ;;  %v1946_v14 = vpop.f32.mrf.mxu0  ;;  %v1837_v44 = vmul.f32 %v4349_v55, %v4680_v4 }
 0x6ea   :  { %3164 = vtanh.f32 %v2020_v6  ;;  %v2019_v21 = vmul.f32 0.5, %v1991_v9  ;;  %v1994_v8 = vadd.f32 %v1952_v18, %v4676_v42  ;;  %v1947_v13 = vadd.f32 %v1946_v14, %v1832_v35 }
 0x6eb   :  { %v2866_v48 = vpop.f32.mrf.mxu0 }
 0x6ec   :  { %3166 = vtanh.f32 %v2019_v21  ;;  %v1993_v58 = vadd.f32 %v1947_v13, %v4677_v15  ;;  %v1962_v62 = vadd.f32 %v2866_v48, %v1835_v53  ;;  %v3153_v29 = vpop.eup %3152  ;;  %v1836_v53 = vmul.f32 %v4349_v55, %v4682_v23 }
 0x6ed   :  { %3168 = vtanh.f32 %v1994_v8  ;;  %v1956_v57 = vpop.f32.mrf.mxu0  ;;  %v3155_v9 = vpop.eup %3154  ;;  %v1839_v21 = vmul.f32 %v4349_v55, %v4683_v54  ;;  %v2010_v48 = vmul.f32 0.5, %v3153_v29 }
 0x6ee   :  { %3170 = vtanh.f32 %v1993_v58  ;;  %v1996_v33 = vadd.f32 %v1962_v62, %v4679_v16  ;;  %v1957_v30 = vadd.f32 %v1956_v57, %v1834_v47  ;;  %v2009_v47 = vmul.f32 0.5, %v3155_v9 }
 0x6ef   :  { %v2869_v7 = vpop.f32.mrf.mxu0  ;;  %v2014_v15 = vadd.f32 0.5, %v2010_v48 }
 0x6f0   :  { %3172 = vtanh.f32 %v1996_v33  ;;  %v1995_v35 = vadd.f32 %v1957_v30, %v4681_v10  ;;  %v1972_v18 = vadd.f32 %v2869_v7, %v1837_v44  ;;  %v1838_v30 = vmul.f32 %v4349_v55, %v4684_v19  ;;  %v4686_v10 = vld [vmem:[#allocation31_spill] sm:$0xff] }
 0x6f1   :  { %v1966_v6 = vpop.f32.mrf.mxu0 }
 0x6f2   :  { %3174 = vtanh.f32 %v1995_v35  ;;  %v1967_v57 = vadd.f32 %v1966_v6, %v1836_v53  ;;  %v1998_v4 = vadd.f32 %v1972_v18, %v4686_v10  ;;  %v2013_v6 = vadd.f32 0.5, %v2009_v47 }
 0x6f3   :  { %v3157_v14 = vpop.eup %3156  ;;  %v2872_v8 = vpop.f32.mrf.mxu0 }
 0x6f4   :  { %v3159_v13 = vpop.eup %3158  ;;  %v2026_v58 = vmul.f32 0.5, %v3157_v14  ;;  %v1982_v33 = vadd.f32 %v2872_v8, %v1839_v21  ;;  %v1997_v53 = vadd.f32 %v1967_v57, %v3640_v63  ;;  %v2038_v10 = vmul.f32 0.5, %v1998_v4 }
 0x6f5   :  { %v3161_v62 = vpop.eup %3160  ;;  %v1976_v7 = vpop.f32.mrf.mxu0  ;;  %v2012_v29 = vmul.f32 0.5, %v3159_v13 }
 0x6f6   :  { %v3163_v44 = vpop.eup %3162  ;;  %v2025_v35 = vmul.f32 0.5, %v3161_v62  ;;  %v2030_v16 = vadd.f32 0.5, %v2026_v58  ;;  %v2000_v54 = vadd.f32 %v1982_v33, %v4631_v11  ;;  %v1977_v2 = vadd.f32 %v1976_v7, %v1838_v30 }
 0x6f7   :  { %v3165_v23 = vpop.eup %3164  ;;  %v2011_v62 = vmul.f32 0.5, %v3163_v44  ;;  %v2016_v48 = vadd.f32 0.5, %v2012_v29 }
 0x6f8   :  { %v2029_v14 = vadd.f32 0.5, %v2025_v35  ;;  %v2028_v42 = vmul.f32 0.5, %v3165_v23  ;;  %v2040_v21 = vmul.f32 0.5, %v2000_v54  ;;  %v1999_v55 = vadd.f32 %v1977_v2, %v4632_v27 }
 0x6f9   :  { %v3167_v9 = vpop.eup %3166  ;;  %v2054_v33 = vmul.f32 %v2030_v16, %v4227_v28  ;;  %v2037_v2 = vmul.f32 0.5, %v1997_v53  ;;  %v2015_v35 = vadd.f32 0.5, %v2011_v62 }
 0x6fa   :  { %v3169_v8 = vpop.eup %3168  ;;  %v2032_v19 = vadd.f32 0.5, %v2028_v42  ;;  %v2027_v18 = vmul.f32 0.5, %v3167_v9  ;;  %3176 = vtanh.f32 %v2040_v21  ;;  %v2039_v13 = vmul.f32 0.5, %v1999_v55 }
 0x6fb   :  { %v3171_v58 = vpop.eup %3170  ;;  %v2058_v30 = vmul.f32 %v3169_v8, %v2014_v15  ;;  %v2053_v23 = vmul.f32 %v2029_v14, %v4230_v37 }
 0x6fc   :  { %v2057_v47 = vmul.f32 %v3171_v58, %v2013_v6  ;;  %v2031_v57 = vadd.f32 0.5, %v2027_v18  ;;  %3178 = vtanh.f32 %v2039_v13  ;;  %v2056_v42 = vmul.f32 %v2032_v19, %v4232_v43 }
 0x6fd   :  { %v3173_v7 = vpop.eup %3172  ;;  %v4401_v54 = vadd.f32 %v2058_v30, %v2054_v33  ;;  %3180 = vtanh.f32 %v2038_v10 }
 0x6fe   :  { %v4404_v44 = vadd.f32 %v2057_v47, %v2053_v23  ;;  %v2060_v4 = vmul.f32 %v3173_v7, %v2016_v48  ;;  %v2055_v28 = vmul.f32 %v2031_v57, %v4236_v31  ;;  %3182 = vtanh.f32 %v2037_v2 }
 0x6ff   :  { %v3175_v15 = vpop.eup %3174 }
 0x700   :  { %v4406_v16 = vadd.f32 %v2060_v4, %v2056_v42  ;;  %v2059_v37 = vmul.f32 %v3175_v15, %v2015_v35  ;;  %v4691_v4 = vld [vmem:[#allocation12_spill] sm:$0xff] }
 0x702   :  { %3184 = vtanh.f32 %v4406_v16  ;;  %v4410_v29 = vadd.f32 %v2059_v37, %v2055_v28 }
 0x703   :  { %3186 = vtanh.f32 %v4401_v54 }
 0x704   :  { %3188 = vtanh.f32 %v4410_v29 }
 0x705   :  { %3190 = vtanh.f32 %v4404_v44 }
 0x707   :  { %v3177_v19 = vpop.eup %3176 }
 0x708   :  { %v2048_v10 = vmul.f32 0.5, %v3177_v19 }
 0x709   :  { %v3179_v43 = vpop.eup %3178 }
 0x70a   :  { %v3181_v14 = vpop.eup %3180  ;;  %v2047_v9 = vmul.f32 0.5, %v3179_v43  ;;  %v2052_v53 = vadd.f32 0.5, %v2048_v10 }
 0x70b   :  { %v3183_v6 = vpop.eup %3182  ;;  %v2046_v21 = vmul.f32 0.5, %v3181_v14 }
 0x70c   :  { %v2051_v62 = vadd.f32 0.5, %v2047_v9  ;;  %v2045_v18 = vmul.f32 0.5, %v3183_v6  ;;  %v4692_v6 = vld [vmem:[#allocation9_spill] sm:$0xff] }
 0x70d   :  { %v2050_v30 = vadd.f32 0.5, %v2046_v21 }
 0x70e   :  { %v2049_v23 = vadd.f32 0.5, %v2045_v18 }
 0x70f   :  { %v3185_v31 = vpop.eup %3184 }
 0x710   :  { %v2072_v55 = vmul.f32 %v3185_v31, %v2052_v53  ;;  %v3187_v8 = vpop.eup %3186 }
 0x711   :  { %v3189_v58 = vpop.eup %3188  ;;  %v2070_v48 = vmul.f32 %v3187_v8, %v2050_v30 }
 0x712   :  { %2873 = vmatprep.subr.mxu1 %v2072_v55  ;;  %v2071_v33 = vmul.f32 %v3189_v58, %v2051_v62  ;;  %v3191_v13 = vpop.eup %3190 }
 0x713   :  { %2874 = vmatpush3.msra.mxu1 %v2072_v55  ;;  %v2069_v47 = vmul.f32 %v3191_v13, %v2049_v23 }
 0x714   :  { %2875 = vmatprep.subr.mxu1 %v2071_v33 }
 0x715   :  { %2876 = vmatpush3.msra.mxu1 %v2071_v33 }
 0x716   :  { %2877 = vmatprep.subr.mxu1 %v2070_v48 }
 0x717   :  { %2878 = vmatpush3.msra.mxu1 %v2070_v48 }
 0x718   :  { %2879 = vmatprep.subr.mxu1 %v2069_v47 }
 0x719   :  { %2880 = vmatpush3.msra.mxu1 %v2069_v47 }
 0x71a   :  { %2882 = vmatmul.mubr.msk.f32.vlgmr.msra.gmra.mxu1 %vm267_vm0, %v4244_v39  ;;  %v4448_v39 = vld [vmem:[%s4505_s0 + $0x7] ss:$0 sm:$0xff]  ;;  %s3287_s0 = smov [#allocation4]  }
 0x71b   :  { %2884 = vmatprep.mubr.msk.f32.mxu1 %vm267_vm0, %v4251_v46  ;;  %v4687_v46 = vld [vmem:[#allocation11_spill] sm:$0xff]  ;;  %v2083_v35 = vmul.f32 %v4448_v39, %v4691_v4  ;;  %v2082_v43 = vmul.f32 %v4448_v39, %v3545_v59  ;;  %v2085_v53 = vmul.f32 %v4448_v39, %v4692_v6  ;;  %s2351_s26 = sshll.u32 %s3287_s0, 4  ;;  %s2352_s26 = int_to_ptr.vmem [resolvable:$true] %s2351_s26 }
 0x71c   :  { %s3263_s27 = scalar_lea.vmem %s2352_s26, 512  ;;  %p3268_p1 = scmp.lt.s32.totalorder %s2352_s26, %s2352_s26 }
 0x71d   :  { %p3264_p0 = scmp.ne.s32.totalorder %s2352_s26, %s3263_s27  ;;  %p3269_p2 = scmp.lt.s32.totalorder %s3263_s27, %s3263_s27 }
 0x71e   :  { %2885 = vmatmul.mubr.msk.f32.gmra.mxu1 %vm267_vm0, %v4258_v60  ;;  %v2079_v60 = vmul.f32 %v4448_v39, %v4687_v46  ;;  %v4693_v46 = vld [vmem:[#allocation23_spill] sm:$0xff] }
 0x71f   :  { %2887 = vmatprep.mubr.msk.f32.mxu1 %vm267_vm0, %v4265_v36  ;;  %p3270_p3 = por %p3269_p2, %p3268_p1 }
 0x721   :  { %p3271_p4 = pnand %p3270_p3, %p3264_p0 }
 0x722   :  { %2888 = vmatmul.mubr.msk.f32.gmra.mxu1 %vm267_vm0, %v4272_v34 }
 0x723   :  { %2890 = vmatprep.mubr.msk.f32.mxu1 %vm267_vm0, %v4279_v40  ;;  %v4688_v40 = vld [vmem:[#allocation14_spill] sm:$0xff] }
 0x726   :  { %2891 = vmatmul.mubr.msk.f32.gmra.mxu1 %vm267_vm0, %v4286_v51  ;;  %v2078_v51 = vmul.f32 %v4448_v39, %v4688_v40 }
 0x727   :  { %2893 = vmatprep.mubr.msk.f32.mxu1 %vm267_vm0, %v4293_v38 }
 0x72a   :  { %2894 = vmatmul.mubr.msk.f32.gmra.mxu1 %vm267_vm0, %v4300_v22 }
 0x72b   :  { %2896 = vmatprep.mubr.msk.f32.mxu1 %vm267_vm0, %v4307_v49  ;;  %v4689_v49 = vld [vmem:[#allocation7_spill] sm:$0xff] }
 0x72e   :  { %2897 = vmatmul.mubr.msk.f32.gmra.mxu1 %vm267_vm0, %v4314_v5  ;;  %v2081_v5 = vmul.f32 %v4448_v39, %v4689_v49 }
 0x72f   :  { %2899 = vmatprep.mubr.msk.f32.mxu1 %vm267_vm0, %v4321_v50 }
 0x732   :  { %2900 = vmatmul.mubr.msk.f32.gmra.mxu1 %vm267_vm0, %v4328_v20 }
 0x733   :  { %2902 = vmatprep.mubr.msk.f32.mxu1 %vm267_vm0, %v4335_v32 }
 0x736   :  { %2903 = vmatmul.mubr.msk.f32.gmra.mxu1 %vm267_vm0, %v4342_v52  ;;  %v4690_v52 = vld [vmem:[#allocation8_spill] sm:$0xff] }
 0x737   :  { %v2080_v7 = vmul.f32 %v4448_v39, %v4690_v52  ;;  %v4698_v52 = vld [vmem:[#allocation29_spill] sm:$0xff] }
 0x7da   :  { %v2883_v36 = vpop.f32.mrf.mxu1 }
 0x7db   :  { %v2166_v34 = vadd.f32 %v2883_v36, %v2079_v60 }
 0x7dc   :  { %v2160_v38 = vpop.f32.mrf.mxu1 }
 0x7dd   :  { %v2161_v22 = vadd.f32 %v2160_v38, %v2078_v51  ;;  %v2240_v20 = vadd.f32 %v2166_v34, %v3555_v0  ;;  %v4694_v34 = vld [vmem:[#allocation24_spill] sm:$0xff]  ;;  %v4695_v51 = vld [vmem:[#allocation17_spill] sm:$0xff] }
 0x7de   :  { %v2886_v50 = vpop.f32.mrf.mxu1 }
 0x7df   :  { %v2176_v32 = vadd.f32 %v2886_v50, %v2081_v5  ;;  %v2239_v57 = vadd.f32 %v2161_v22, %v3561_v3  ;;  %v2256_v37 = vmul.f32 0.5, %v2240_v20  ;;  %v4696_v22 = vld [vmem:[#allocation20_spill] sm:$0xff]  ;;  %v4697_v5 = vld [vmem:[#allocation27_spill] sm:$0xff] }
 0x7e0   :  { %v2170_v2 = vpop.f32.mrf.mxu1 }
 0x7e1   :  { %v2171_v42 = vadd.f32 %v2170_v2, %v2080_v7  ;;  %v2242_v15 = vadd.f32 %v2176_v32, %v3539_v56  ;;  %v2255_v0 = vmul.f32 0.5, %v2239_v57  ;;  %v2084_v56 = vmul.f32 %v4448_v39, %v4669_v17  ;;  %v4699_v2 = vld [vmem:[#allocation22_spill] sm:$0xff] }
 0x7e2   :  { %v2889_v28 = vpop.f32.mrf.mxu1  ;;  %3192 = vtanh.f32 %v2256_v37  ;;  %v2086_v17 = vmul.f32 %v4448_v39, %v4673_v25  ;;  %v2090_v7 = vmul.f32 %v4448_v39, %v4698_v52 }
 0x7e3   :  { %v2186_v19 = vadd.f32 %v2889_v28, %v2083_v35  ;;  %v2241_v10 = vadd.f32 %v2171_v42, %v3549_v61  ;;  %v2258_v31 = vmul.f32 0.5, %v2242_v15  ;;  %3194 = vtanh.f32 %v2255_v0  ;;  %v4700_v15 = vld [vmem:[#allocation31_spill] sm:$0xff] }
 0x7e4   :  { %v2180_v14 = vpop.f32.mrf.mxu1 }
 0x7e5   :  { %v2244_v9 = vadd.f32 %v2186_v19, %v3557_v1  ;;  %v2181_v3 = vadd.f32 %v2180_v14, %v2082_v43  ;;  %v2257_v62 = vmul.f32 0.5, %v2241_v10  ;;  %v2087_v1 = vmul.f32 %v4448_v39, %v4671_v24  ;;  %v4701_v43 = vld [vmem:[#allocation25_spill] sm:$0xff] }
 0x7e6   :  { %v2892_v21 = vpop.f32.mrf.mxu1  ;;  %v2089_v24 = vmul.f32 %v4448_v39, %v4675_v12  ;;  %v2091_v12 = vmul.f32 %v4448_v39, %v4697_v5  ;;  %v2093_v0 = vmul.f32 %v4448_v39, %v4701_v43 }
 0x7e7   :  { %v2272_v55 = vmul.f32 0.5, %v2244_v9  ;;  %v2243_v8 = vadd.f32 %v2181_v3, %v4670_v41  ;;  %v2196_v59 = vadd.f32 %v2892_v21, %v2085_v53 }
 0x7e8   :  { %v2190_v61 = vpop.f32.mrf.mxu1 }
 0x7e9   :  { %3196 = vtanh.f32 %v2272_v55  ;;  %v2271_v18 = vmul.f32 0.5, %v2243_v8  ;;  %v2246_v58 = vadd.f32 %v2196_v59, %v4672_v45  ;;  %v2191_v33 = vadd.f32 %v2190_v61, %v2084_v56  ;;  %v4702_v56 = vld [vmem:[#allocation26_spill] sm:$0xff] }
 0x7ea   :  { %3198 = vtanh.f32 %v2258_v31  ;;  %v2895_v30 = vpop.f32.mrf.mxu1  ;;  %v2092_v55 = vmul.f32 %v4448_v39, %v4702_v56 }
 0x7eb   :  { %3200 = vtanh.f32 %v2271_v18  ;;  %v2274_v13 = vmul.f32 0.5, %v2246_v58  ;;  %v2245_v41 = vadd.f32 %v2191_v33, %v4674_v26  ;;  %v2206_v48 = vadd.f32 %v2895_v30, %v2087_v1 }
 0x7ec   :  { %3202 = vtanh.f32 %v2257_v62  ;;  %v2200_v23 = vpop.f32.mrf.mxu1  ;;  %v2088_v26 = vmul.f32 %v4448_v39, %v4695_v51 }
 0x7ed   :  { %3204 = vtanh.f32 %v2274_v13  ;;  %v2273_v47 = vmul.f32 0.5, %v2245_v41  ;;  %v2248_v45 = vadd.f32 %v2206_v48, %v4693_v46  ;;  %v2201_v60 = vadd.f32 %v2200_v23, %v2086_v17 }
 0x7ee   :  { %v2898_v36 = vpop.f32.mrf.mxu1 }
 0x7ef   :  { %3206 = vtanh.f32 %v2273_v47  ;;  %v2247_v40 = vadd.f32 %v2201_v60, %v4694_v34  ;;  %v2216_v25 = vadd.f32 %v2898_v36, %v2089_v24  ;;  %v3193_v57 = vpop.eup %3192 }
 0x7f0   :  { %3208 = vtanh.f32 %v2248_v45  ;;  %v2210_v38 = vpop.f32.mrf.mxu1  ;;  %v3195_v35 = vpop.eup %3194  ;;  %v2264_v31 = vmul.f32 0.5, %v3193_v57 }
 0x7f1   :  { %3210 = vtanh.f32 %v2247_v40  ;;  %v2250_v49 = vadd.f32 %v2216_v25, %v4696_v22  ;;  %v2211_v50 = vadd.f32 %v2210_v38, %v2088_v26  ;;  %v2263_v62 = vmul.f32 0.5, %v3195_v35 }
 0x7f2   :  { %v2901_v20 = vpop.f32.mrf.mxu1  ;;  %v2268_v48 = vadd.f32 0.5, %v2264_v31 }
 0x7f3   :  { %3212 = vtanh.f32 %v2250_v49  ;;  %v2226_v32 = vadd.f32 %v2901_v20, %v2091_v12  ;;  %v2249_v42 = vadd.f32 %v2211_v50, %v4699_v2  ;;  %v2267_v47 = vadd.f32 0.5, %v2263_v62 }
 0x7f4   :  { %v2220_v4 = vpop.f32.mrf.mxu1 }
 0x7f5   :  { %v2252_v28 = vadd.f32 %v2226_v32, %v4700_v15  ;;  %v2221_v37 = vadd.f32 %v2220_v4, %v2090_v7  ;;  %3214 = vtanh.f32 %v2249_v42 }
 0x7f6   :  { %v3197_v19 = vpop.eup %3196  ;;  %v2904_v10 = vpop.f32.mrf.mxu1 }
 0x7f7   :  { %v3199_v14 = vpop.eup %3198  ;;  %v2280_v9 = vmul.f32 0.5, %v3197_v19  ;;  %v2292_v3 = vmul.f32 0.5, %v2252_v28  ;;  %v2251_v6 = vadd.f32 %v2221_v37, %v3640_v63  ;;  %v2236_v21 = vadd.f32 %v2904_v10, %v2093_v0 }
 0x7f8   :  { %v3201_v53 = vpop.eup %3200  ;;  %v2230_v8 = vpop.f32.mrf.mxu1  ;;  %v2266_v17 = vmul.f32 0.5, %v3199_v14 }
 0x7f9   :  { %v3203_v59 = vpop.eup %3202  ;;  %v2279_v61 = vmul.f32 0.5, %v3201_v53  ;;  %v2291_v1 = vmul.f32 0.5, %v2251_v6  ;;  %v2284_v58 = vadd.f32 0.5, %v2280_v9  ;;  %3216 = vtanh.f32 %v2292_v3 }
 0x7fa   :  { %v3205_v18 = vpop.eup %3204  ;;  %v2254_v33 = vadd.f32 %v2236_v21, %v4631_v11  ;;  %v2231_v30 = vadd.f32 %v2230_v8, %v2092_v55  ;;  %v2265_v46 = vmul.f32 0.5, %v3203_v59  ;;  %v2270_v25 = vadd.f32 0.5, %v2266_v17 }
 0x7fb   :  { %v2283_v13 = vadd.f32 0.5, %v2279_v61  ;;  %v2282_v63 = vmul.f32 0.5, %v3205_v18  ;;  %3218 = vtanh.f32 %v2291_v1  ;;  %v2308_v34 = vmul.f32 %v2284_v58, %v4401_v54 }
 0x7fc   :  { %v3207_v41 = vpop.eup %3206  ;;  %v2294_v23 = vmul.f32 0.5, %v2254_v33  ;;  %v2253_v39 = vadd.f32 %v2231_v30, %v4632_v27  ;;  %v2269_v50 = vadd.f32 0.5, %v2265_v46 }
 0x7fd   :  { %v3209_v24 = vpop.eup %3208  ;;  %v2286_v45 = vadd.f32 0.5, %v2282_v63  ;;  %v2281_v60 = vmul.f32 0.5, %v3207_v41  ;;  %v2307_v51 = vmul.f32 %v2283_v13, %v4404_v44 }
 0x7fe   :  { %v3211_v36 = vpop.eup %3210  ;;  %v2312_v40 = vmul.f32 %v3209_v24, %v2268_v48  ;;  %3220 = vtanh.f32 %v2294_v23  ;;  %v2293_v11 = vmul.f32 0.5, %v2253_v39 }
 0x7ff   :  { %v2311_v26 = vmul.f32 %v3211_v36, %v2267_v47  ;;  %v2285_v22 = vadd.f32 0.5, %v2281_v60  ;;  %v2310_v27 = vmul.f32 %v2286_v45, %v4406_v16 }
 0x800   :  { %v3213_v38 = vpop.eup %3212  ;;  %v2316_v49 = vadd.f32 %v2312_v40, %v2308_v34  ;;  %3222 = vtanh.f32 %v2293_v11 }
 0x801   :  { %v2315_v5 = vadd.f32 %v2311_v26, %v2307_v51  ;;  %v2314_v12 = vmul.f32 %v3213_v38, %v2270_v25  ;;  %v2309_v32 = vmul.f32 %v2285_v22, %v4410_v29 }
 0x802   :  { %3224 = vtanh.f32 %v2316_v49  ;;  %v3215_v20 = vpop.eup %3214 }
 0x803   :  { %3226 = vtanh.f32 %v2315_v5  ;;  %v2318_v54 = vadd.f32 %v2314_v12, %v2310_v27  ;;  %v2313_v52 = vmul.f32 %v3215_v20, %v2269_v50 }
 0x805   :  { %3228 = vtanh.f32 %v2318_v54  ;;  %v2317_v7 = vadd.f32 %v2313_v52, %v2309_v32 }
 0x806   :  { %v3217_v44 = vpop.eup %3216 }
 0x807   :  { %3230 = vtanh.f32 %v2317_v7  ;;  %v2300_v2 = vmul.f32 0.5, %v3217_v44 }
 0x808   :  { %v3219_v57 = vpop.eup %3218 }
 0x809   :  { %v2299_v4 = vmul.f32 0.5, %v3219_v57  ;;  %v2304_v15 = vadd.f32 0.5, %v2300_v2 }
 0x80b   :  { %v3221_v42 = vpop.eup %3220  ;;  %v2303_v37 = vadd.f32 0.5, %v2299_v4 }
 0x80c   :  { %v2302_v16 = vmul.f32 0.5, %v3221_v42 }
 0x80d   :  { %v3223_v35 = vpop.eup %3222 }
 0x80e   :  { %v2301_v0 = vmul.f32 0.5, %v3223_v35  ;;  %v2306_v14 = vadd.f32 0.5, %v2302_v16 }
 0x80f   :  { %v3225_v28 = vpop.eup %3224 }
 0x810   :  { %v3227_v19 = vpop.eup %3226  ;;  %v2324_v43 = vmul.f32 %v3225_v28, %v2304_v15  ;;  %v2305_v3 = vadd.f32 0.5, %v2301_v0 }
 0x811   :  { %v2323_v10 = vmul.f32 %v3227_v19, %v2303_v37 }
 0x812   :  { %v3229_v29 = vpop.eup %3228  ;;  %2343 = vst [vmem:[#allocation4 + $0x8] sm:$0xff] %v2324_v43 }
 0x813   :  { %2342 = vst [vmem:[#allocation4] sm:$0xff] %v2323_v10  ;;  %v2326_v9 = vmul.f32 %v3229_v29, %v2306_v14 }
 0x814   :  { %v3231_v6 = vpop.eup %3230 }
 0x815   :  { %2345 = vst [vmem:[#allocation4 + $0x18] sm:$0xff] %v2326_v9  ;;  %v2325_v53 = vmul.f32 %v3231_v6, %v2305_v3 }
 0x817   :  { %2344 = vst [vmem:[#allocation4 + $0x10] sm:$0xff] %v2325_v53 }
 0x818   :  { %3274 = shalt.err (!%p3271_p4)
}
 0x819   :  { %s3288_s28 = smov 128   ;;  %s3289_s29 = smov 8  }
 0x81a   :  { %2357 = dma.vmem_to_hbm [thread:$0]  %s2352_s26, 512, %s4509_s4, [#allocation5], %s3288_s28, %s3288_s28, %s3289_s29  }
 0x81b   :  { %3283 = dma.done.wait [#allocation5], 512  }
 0x81c   :  { %3284 = vsyncadd [#allocation5], 4294966784 }
 0x81d   :  { %2361 = vsyncpa [#allocation5], 1 }

</bundles_post_ra>
